<compile_context>
chip_gen: v5e
topology: v5e:2x2
jax: 0.10.0
libtpu: 0.0.40
codegen_flags: <defaults>
</compile_context>

<pallas_src>
import functools

import jax
import jax.numpy as jnp
from jax.experimental import pallas as pl
from jax.experimental.pallas import tpu as pltpu


# ------------------------------- Pallas kernel -------------------------------

def _ggrl_kernel(num_layers, Hs,
                 ht_ref,     # [Hs, Np]   f32  node features, feature-major (nodes on lanes)
                 at_ref,     # [3*Np, Np] bf16 stacked transposed adjacencies [A_ast^T; A_cfg^T; A_dfg^T]
                 wh_ref,     # [6*Hs, Hs] bf16 [W_ast^T; W_cfg^T; W_dfg^T; W_hr^T; W_hz^T; W_hn^T]
                 wi_ref,     # [3*Hs, Hs] bf16 [W_ir^T; W_iz^T; W_in^T]
                 bi_ref,     # [3*Hs, 1]  f32  b_ih^T with GCN biases folded through W_ih
                 bh_ref,     # [3*Hs, 1]  f32  b_hh^T
                 out_ref):   # [Hs, Np]   f32
    H = Hs
    Np = out_ref.shape[1]
    bf16 = jnp.bfloat16

    at = at_ref[...]
    wh = wh_ref[...]
    wi = wi_ref[...]
    # Hoist bias lane-broadcasts out of the layer loop (JAX does not CSE
    # broadcast_in_dim); at this regime (small Np) the residency is negligible.
    b_i = jnp.broadcast_to(bi_ref[...], (3 * H, Np))
    b_h = jnp.broadcast_to(bh_ref[...], (3 * H, Np))

    def layer(h):
        hb = h.astype(bf16)
        # One fused MXU pass for all four h-side matmuls -> [6*Hs, Np].
        hxw = jnp.dot(wh, hb, preferred_element_type=jnp.float32)
        # Fused message passing: ONE long-K dot
        #   [Hs, 3*Np] @ [3*Np, Np]  ==  sum_e (h @ W_e)^T @ A_e^T
        # (lane-domain concat of 128-aligned pieces; GCN biases folded into b_i).
        xw_cat = jnp.concatenate(
            [hxw[0 * H:1 * H].astype(bf16),
             hxw[1 * H:2 * H].astype(bf16),
             hxw[2 * H:3 * H].astype(bf16)], axis=1)
        gh = hxw[3 * H:6 * H] + b_h                                      # GRU h-gates (f32)
        agg = jnp.dot(xw_cat, at, preferred_element_type=jnp.float32)    # [Hs, Np]
        gi = jnp.dot(wi, agg.astype(bf16),
                     preferred_element_type=jnp.float32) + b_i           # [3*Hs, Np]

        # PyTorch GRU gate order r, z, n — gates are Hs-aligned sublane slices.
        r = jax.nn.sigmoid(gi[0:H] + gh[0:H])
        z = jax.nn.sigmoid(gi[H:2 * H] + gh[H:2 * H])
        n = jnp.tanh(gi[2 * H:3 * H] + r * gh[2 * H:3 * H])
        return n + z * (h - n)                       # == (1 - z) * n + z * h

    h = ht_ref[...]
    if num_layers <= 6:
        for _ in range(num_layers):                  # static unroll (LLO visibility)
            h = layer(h)
    else:
        h = jax.lax.fori_loop(0, num_layers, lambda _, hh: layer(hh), h)
    out_ref[...] = h


# ---------------------------------- wrapper ----------------------------------

def _round_up(v, m):
    return ((v + m - 1) // m) * m


def _pad_to(a, rows, cols):
    return jnp.pad(a, ((0, rows - a.shape[0]), (0, cols - a.shape[1])))


def _gate_T_stack(w, h, hs):
    """[h, 3h] gate-major weight -> stacked transposed gates [3*hs, hs]."""
    return jnp.concatenate(
        [_pad_to(w[:, g * h:(g + 1) * h].T, hs, hs) for g in range(3)], axis=0)


def _gate_T_bias(b, h, hs):
    """[1, 3h] gate-major bias -> stacked column bias [3*hs, 1]."""
    return jnp.concatenate(
        [_pad_to(b[:, g * h:(g + 1) * h].T, hs, 1) for g in range(3)], axis=0)


def _gcn_adjacency_T(edge_index, n, n_pad, dtype):
    """A_hat^T = (D^{-1/2}(A+I)D^{-1/2})^T, dense, zero-padded to [n_pad, n_pad]."""
    src, dst = edge_index[0], edge_index[1]
    loop = jnp.arange(n, dtype=src.dtype)
    src = jnp.concatenate([src, loop])
    dst = jnp.concatenate([dst, loop])
    w = jnp.ones(src.shape[0], jnp.float32)
    deg = jnp.zeros((n,), jnp.float32).at[dst].add(w)      # in-degree incl. self-loops
    dinv = jnp.where(deg > 0, jax.lax.rsqrt(deg), 0.0)
    norm = dinv[src] * dinv[dst] * w
    # A_hat[dst, src] = norm  ->  A_hat^T[src, dst] = norm ; pads stay zero.
    return jnp.zeros((n_pad, n_pad), jnp.float32).at[src, dst].add(norm).astype(dtype)


def _vmem_capacity_bytes():
    try:
        return int(pltpu.get_tpu_info().vmem_capacity_bytes)
    except Exception:
        return 64 << 20          # conservative default (v7x per-core VMEM)


@functools.partial(jax.jit, static_argnames=("num_layers",))
def gated_graph_recurrent_layer(x, edge_ast, edge_cfg, edge_dfg, params, num_layers):
    """x: [N, H] node features; edge_*: [2, E] int edge indices (src, dst)."""
    N, H = x.shape
    Hs = _round_up(H, 8)       # sublane-aligned feature rows (gate slices Hs-aligned)
    Np = _round_up(N, 128)     # lane-dense node axis (nodes live on the 128 lanes)
    f32, bf16 = jnp.float32, jnp.bfloat16

    # Stacked transposed adjacency, built directly at padded shape: [3*Np, Np].
    # TODO(synk): on v7x, store this in fp8 (e4m3) to halve VMEM/DMA for the
    # dominant operand; kept bf16 here so one binary runs on v5e/v6e/v7x.
    at_stack = jnp.concatenate(
        [_gcn_adjacency_T(e, N, Np, bf16) for e in (edge_ast, edge_cfg, edge_dfg)],
        axis=0)

    # Fused h-side weight: one [6*Hs, Hs] @ [Hs, Np] MXU pass per layer.
    wh = jnp.concatenate(
        [_pad_to(params["w_ast"].T, Hs, Hs),
         _pad_to(params["w_cfg"].T, Hs, Hs),
         _pad_to(params["w_dfg"].T, Hs, Hs),
         _gate_T_stack(params["w_hh"], H, Hs)], axis=0)

    # Fused GRU input weight + GCN-bias folding:
    #   gi^T = W_ih^T @ agg_raw^T + (W_ih^T @ b_sum^T + b_ih^T)
    wi_f32 = _gate_T_stack(params["w_ih"], H, Hs)                          # [3Hs, Hs]
    b_sum_col = _pad_to((params["b_ast"] + params["b_cfg"] + params["b_dfg"]).T, Hs, 1)
    b_i = _gate_T_bias(params["b_ih"], H, Hs) + wi_f32 @ b_sum_col          # [3Hs, 1]
    b_h = _gate_T_bias(params["b_hh"], H, Hs)                               # [3Hs, 1]

    args = (
        _pad_to(x.T, Hs, Np).astype(f32),     # feature-major state, f32 recurrence
        at_stack,
        wh.astype(bf16),
        wi_f32.astype(bf16),
        b_i.astype(f32),
        b_h.astype(f32),
    )

    # ---- generation-aware VMEM budget ---------------------------------------
    footprint = (3 * Np * Np * 2                  # stacked bf16 adjacency
                 + 2 * Hs * Np * 4                # state in + out
                 + 9 * Hs * Hs * 2 + 6 * Hs * 4   # weights + biases
                 + 16 * Hs * Np * 4               # hxw / gi / gh / agg + bias bcasts
                 + 3 * Hs * Np * 2)               # xw_cat
    cap = _vmem_capacity_bytes() - (8 << 20)      # headroom for Mosaic internals
    vmem_limit = int(min(max(2 * footprint, 16 << 20), cap))
    if footprint * 3 // 2 > cap:
        # TODO(synk): row-tiled fallback (grid over node tiles "parallel",
        # adjacency-K reduction "arbitrary", A streamed from HBM via BlockSpec)
        # for graphs whose stacked adjacency no longer fits single-block VMEM.
        raise ValueError(
            f"graph too large for the single-block kernel: ~{footprint >> 20} MiB "
            f"needed vs ~{cap >> 20} MiB VMEM available; tiled path not implemented")

    flops_per_layer = 2 * Np * Hs * (6 * Hs + 3 * Np + 3 * Hs) + 12 * Hs * Np
    cost = pl.CostEstimate(
        flops=int(num_layers * flops_per_layer),
        transcendentals=int(num_layers * 3 * Hs * Np),
        bytes_accessed=int(3 * Np * Np * 2 + 2 * Hs * Np * 4
                           + 9 * Hs * Hs * 2 + 6 * Hs * 4))

    kernel = functools.partial(_ggrl_kernel, num_layers, Hs)
    out = pl.pallas_call(
        kernel,
        out_shape=jax.ShapeDtypeStruct((Hs, Np), f32),
        in_specs=[pl.BlockSpec(memory_space=pltpu.MemorySpace.VMEM)] * len(args),
        out_specs=pl.BlockSpec(memory_space=pltpu.MemorySpace.VMEM),
        compiler_params=pltpu.CompilerParams(vmem_limit_bytes=vmem_limit),
        cost_estimate=cost,
    )(*args)
    # Padded feature rows stay zero; padded node columns may become nonzero after
    # layer 1 but never feed back into valid nodes (their adjacency rows are zero).
    return out[:H, :N].T


# ----------------------------- glue / reference -------------------------------

def dense_gcn_adjacency(edge_index, num_nodes):
    """Node-major A_hat (f32) — used only by the pure-JAX reference."""
    src, dst = edge_index[0], edge_index[1]
    loop = jnp.arange(num_nodes, dtype=src.dtype)
    src = jnp.concatenate([src, loop])
    dst = jnp.concatenate([dst, loop])
    w = jnp.ones(src.shape[0], jnp.float32)
    deg = jnp.zeros((num_nodes,), jnp.float32).at[dst].add(w)
    dinv = jnp.where(deg > 0, 1.0 / jnp.sqrt(deg), 0.0)
    norm = dinv[src] * dinv[dst] * w
    return jnp.zeros((num_nodes, num_nodes), jnp.float32).at[dst, src].add(norm)


def reference_forward(x, a_ast, a_cfg, a_dfg, p, num_layers):
    """Pure-JAX f32 reference matching the PyTorch forward pass."""
    H = x.shape[1]
    h = x
    for _ in range(num_layers):
        agg = (a_ast @ (h @ p["w_ast"]) + p["b_ast"]
               + a_cfg @ (h @ p["w_cfg"]) + p["b_cfg"]
               + a_dfg @ (h @ p["w_dfg"]) + p["b_dfg"])
        gi = agg @ p["w_ih"] + p["b_ih"]
        gh = h @ p["w_hh"] + p["b_hh"]
        r = jax.nn.sigmoid(gi[:, :H] + gh[:, :H])
        z = jax.nn.sigmoid(gi[:, H:2 * H] + gh[:, H:2 * H])
        n = jnp.tanh(gi[:, 2 * H:] + r * gh[:, 2 * H:])
        h = (1.0 - z) * n + z * h
    return h


def init_params(key, hidden):
    """Deterministic synthetic parameters (PyTorch-like uniform init)."""
    ks = jax.random.split(key, 10)
    s = 1.0 / jnp.sqrt(hidden)

    def u(k, shape):
        return jax.random.uniform(k, shape, jnp.float32, -s, s)

    return {
        # GCNConv weights stored as [H_in, H_out] so the math reads h @ W
        "w_ast": u(ks[0], (hidden, hidden)), "b_ast": u(ks[1], (1, hidden)),
        "w_cfg": u(ks[2], (hidden, hidden)), "b_cfg": u(ks[3], (1, hidden)),
        "w_dfg": u(ks[4], (hidden, hidden)), "b_dfg": u(ks[5], (1, hidden)),
        # GRU weights: PyTorch stores (3H, H); here pre-transposed to (H, 3H)
        "w_ih": u(ks[6], (hidden, 3 * hidden)), "b_ih": u(ks[7], (1, 3 * hidden)),
        "w_hh": u(ks[8], (hidden, 3 * hidden)), "b_hh": u(ks[9], (1, 3 * hidden)),
    }


if __name__ == "__main__":
    N = 64          # number of graph nodes
    H = 32          # hidden_size
    E = 128         # edges per edge type
    NUM_LAYERS = 3  # num_layers (message-passing iterations)

    key = jax.random.PRNGKey(0)
    kx, ka, kc, kd, kp = jax.random.split(key, 5)

    x = jax.random.normal(kx, (N, H), jnp.float32)
    edge_ast = jax.random.randint(ka, (2, E), 0, N, jnp.int32)
    edge_cfg = jax.random.randint(kc, (2, E), 0, N, jnp.int32)
    edge_dfg = jax.random.randint(kd, (2, E), 0, N, jnp.int32)

    params = init_params(kp, H)

    h_out = gated_graph_recurrent_layer(x, edge_ast, edge_cfg, edge_dfg, params,
                                        num_layers=NUM_LAYERS)
    h_out = jax.block_until_ready(h_out)

    a_ast = dense_gcn_adjacency(edge_ast, N)
    a_cfg = dense_gcn_adjacency(edge_cfg, N)
    a_dfg = dense_gcn_adjacency(edge_dfg, N)
    h_ref = reference_forward(x, a_ast, a_cfg, a_dfg, params, NUM_LAYERS)

    assert h_out.shape == (N, H)
    max_err = float(jnp.max(jnp.abs(h_out - h_ref)))
    # bf16 matmul operands (f32 accumulation) -> loosened tolerance vs f32 ref.
    assert jnp.allclose(h_out, h_ref, rtol=5e-2, atol=5e-2), max_err

    print("KERNEL_OK")
</pallas_src>

<mosaic_0001>
module attributes {stable_mosaic.version = 11 : i64} {
  func.func @_ggrl_kernel(%arg0: memref<32x128xf32, #tpu.memory_space<vmem>>, %arg1: memref<384x128xbf16, #tpu.memory_space<vmem>>, %arg2: memref<192x32xbf16, #tpu.memory_space<vmem>>, %arg3: memref<96x32xbf16, #tpu.memory_space<vmem>>, %arg4: memref<96x1xf32, #tpu.memory_space<vmem>>, %arg5: memref<96x1xf32, #tpu.memory_space<vmem>>, %arg6: memref<32x128xf32, #tpu.memory_space<vmem>>) attributes {dimension_semantics = [], scalar_prefetch = 0 : i64, scratch_operands = 0 : i64, tpu.core_type = #tpu.core_type<tc>} {
    %c0 = arith.constant 0 : index
    %c0_0 = arith.constant 0 : index
    %0 = vector.load %arg1[%c0, %c0_0] : memref<384x128xbf16, #tpu.memory_space<vmem>>, vector<384x128xbf16>
    %c0_1 = arith.constant 0 : index
    %c0_2 = arith.constant 0 : index
    %1 = vector.load %arg2[%c0_1, %c0_2] : memref<192x32xbf16, #tpu.memory_space<vmem>>, vector<192x32xbf16>
    %c0_3 = arith.constant 0 : index
    %c0_4 = arith.constant 0 : index
    %2 = vector.load %arg3[%c0_3, %c0_4] : memref<96x32xbf16, #tpu.memory_space<vmem>>, vector<96x32xbf16>
    %c0_5 = arith.constant 0 : index
    %c0_6 = arith.constant 0 : index
    %3 = vector.load %arg4[%c0_5, %c0_6] : memref<96x1xf32, #tpu.memory_space<vmem>>, vector<96x1xf32>
    %4 = vector.shape_cast %3 : vector<96x1xf32> to vector<96x1xf32>
    %5 = vector.broadcast %4 : vector<96x1xf32> to vector<96x128xf32>
    %c0_7 = arith.constant 0 : index
    %c0_8 = arith.constant 0 : index
    %6 = vector.load %arg5[%c0_7, %c0_8] : memref<96x1xf32, #tpu.memory_space<vmem>>, vector<96x1xf32>
    %7 = vector.shape_cast %6 : vector<96x1xf32> to vector<96x1xf32>
    %8 = vector.broadcast %7 : vector<96x1xf32> to vector<96x128xf32>
    %c0_9 = arith.constant 0 : index
    %c0_10 = arith.constant 0 : index
    %9 = vector.load %arg0[%c0_9, %c0_10] : memref<32x128xf32, #tpu.memory_space<vmem>>, vector<32x128xf32>
    %10 = arith.truncf %9 : vector<32x128xf32> to vector<32x128xbf16>
    %cst = arith.constant dense<0.000000e+00> : vector<192x128xf32>
    %11 = tpu.matmul %1, %10, %cst {dimension_numbers = #tpu.dot_dimension_numbers<[1], [0], [0], [1], [0, 0, 1, 1], [], []>} : vector<192x32xbf16>, vector<32x128xbf16>, vector<192x128xf32> -> vector<192x128xf32>
    %12 = vector.extract_strided_slice %11 {offsets = [0, 0], sizes = [32, 128], strides = [1, 1]} : vector<192x128xf32> to vector<32x128xf32>
    %13 = arith.truncf %12 : vector<32x128xf32> to vector<32x128xbf16>
    %14 = vector.extract_strided_slice %11 {offsets = [32, 0], sizes = [32, 128], strides = [1, 1]} : vector<192x128xf32> to vector<32x128xf32>
    %15 = arith.truncf %14 : vector<32x128xf32> to vector<32x128xbf16>
    %16 = vector.extract_strided_slice %11 {offsets = [64, 0], sizes = [32, 128], strides = [1, 1]} : vector<192x128xf32> to vector<32x128xf32>
    %17 = arith.truncf %16 : vector<32x128xf32> to vector<32x128xbf16>
    %18 = tpu.concatenate %13, %15, %17 in 1 : vector<32x128xbf16>, vector<32x128xbf16>, vector<32x128xbf16> -> vector<32x384xbf16>
    %19 = vector.extract_strided_slice %11 {offsets = [96, 0], sizes = [96, 128], strides = [1, 1]} : vector<192x128xf32> to vector<96x128xf32>
    %20 = arith.addf %19, %8 : vector<96x128xf32>
    %cst_11 = arith.constant dense<0.000000e+00> : vector<32x128xf32>
    %21 = tpu.matmul %18, %0, %cst_11 {dimension_numbers = #tpu.dot_dimension_numbers<[1], [0], [0], [1], [0, 0, 1, 1], [], []>} : vector<32x384xbf16>, vector<384x128xbf16>, vector<32x128xf32> -> vector<32x128xf32>
    %22 = arith.truncf %21 : vector<32x128xf32> to vector<32x128xbf16>
    %cst_12 = arith.constant dense<0.000000e+00> : vector<96x128xf32>
    %23 = tpu.matmul %2, %22, %cst_12 {dimension_numbers = #tpu.dot_dimension_numbers<[1], [0], [0], [1], [0, 0, 1, 1], [], []>} : vector<96x32xbf16>, vector<32x128xbf16>, vector<96x128xf32> -> vector<96x128xf32>
    %24 = arith.addf %23, %5 : vector<96x128xf32>
    %25 = vector.extract_strided_slice %24 {offsets = [0, 0], sizes = [32, 128], strides = [1, 1]} : vector<96x128xf32> to vector<32x128xf32>
    %26 = vector.extract_strided_slice %20 {offsets = [0, 0], sizes = [32, 128], strides = [1, 1]} : vector<96x128xf32> to vector<32x128xf32>
    %27 = arith.addf %25, %26 : vector<32x128xf32>
    %28 = arith.negf %27 : vector<32x128xf32>
    %29 = math.exp %28 : vector<32x128xf32>
    %cst_13 = arith.constant 1.000000e+00 : f32
    %30 = vector.broadcast %cst_13 : f32 to vector<32x128xf32>
    %31 = arith.addf %30, %29 : vector<32x128xf32>
    %32 = arith.divf %30, %31 : vector<32x128xf32>
    %33 = vector.extract_strided_slice %24 {offsets = [32, 0], sizes = [32, 128], strides = [1, 1]} : vector<96x128xf32> to vector<32x128xf32>
    %34 = vector.extract_strided_slice %20 {offsets = [32, 0], sizes = [32, 128], strides = [1, 1]} : vector<96x128xf32> to vector<32x128xf32>
    %35 = arith.addf %33, %34 : vector<32x128xf32>
    %36 = arith.negf %35 : vector<32x128xf32>
    %37 = math.exp %36 : vector<32x128xf32>
    %cst_14 = arith.constant 1.000000e+00 : f32
    %38 = vector.broadcast %cst_14 : f32 to vector<32x128xf32>
    %39 = arith.addf %38, %37 : vector<32x128xf32>
    %40 = arith.divf %38, %39 : vector<32x128xf32>
    %41 = vector.extract_strided_slice %24 {offsets = [64, 0], sizes = [32, 128], strides = [1, 1]} : vector<96x128xf32> to vector<32x128xf32>
    %42 = vector.extract_strided_slice %20 {offsets = [64, 0], sizes = [32, 128], strides = [1, 1]} : vector<96x128xf32> to vector<32x128xf32>
    %43 = arith.mulf %32, %42 : vector<32x128xf32>
    %44 = arith.addf %41, %43 : vector<32x128xf32>
    %45 = math.tanh %44 : vector<32x128xf32>
    %46 = arith.subf %9, %45 : vector<32x128xf32>
    %47 = arith.mulf %40, %46 : vector<32x128xf32>
    %48 = arith.addf %45, %47 : vector<32x128xf32>
    %49 = arith.truncf %48 : vector<32x128xf32> to vector<32x128xbf16>
    %cst_15 = arith.constant dense<0.000000e+00> : vector<192x128xf32>
    %50 = tpu.matmul %1, %49, %cst_15 {dimension_numbers = #tpu.dot_dimension_numbers<[1], [0], [0], [1], [0, 0, 1, 1], [], []>} : vector<192x32xbf16>, vector<32x128xbf16>, vector<192x128xf32> -> vector<192x128xf32>
    %51 = vector.extract_strided_slice %50 {offsets = [0, 0], sizes = [32, 128], strides = [1, 1]} : vector<192x128xf32> to vector<32x128xf32>
    %52 = arith.truncf %51 : vector<32x128xf32> to vector<32x128xbf16>
    %53 = vector.extract_strided_slice %50 {offsets = [32, 0], sizes = [32, 128], strides = [1, 1]} : vector<192x128xf32> to vector<32x128xf32>
    %54 = arith.truncf %53 : vector<32x128xf32> to vector<32x128xbf16>
    %55 = vector.extract_strided_slice %50 {offsets = [64, 0], sizes = [32, 128], strides = [1, 1]} : vector<192x128xf32> to vector<32x128xf32>
    %56 = arith.truncf %55 : vector<32x128xf32> to vector<32x128xbf16>
    %57 = tpu.concatenate %52, %54, %56 in 1 : vector<32x128xbf16>, vector<32x128xbf16>, vector<32x128xbf16> -> vector<32x384xbf16>
    %58 = vector.extract_strided_slice %50 {offsets = [96, 0], sizes = [96, 128], strides = [1, 1]} : vector<192x128xf32> to vector<96x128xf32>
    %59 = arith.addf %58, %8 : vector<96x128xf32>
    %cst_16 = arith.constant dense<0.000000e+00> : vector<32x128xf32>
    %60 = tpu.matmul %57, %0, %cst_16 {dimension_numbers = #tpu.dot_dimension_numbers<[1], [0], [0], [1], [0, 0, 1, 1], [], []>} : vector<32x384xbf16>, vector<384x128xbf16>, vector<32x128xf32> -> vector<32x128xf32>
    %61 = arith.truncf %60 : vector<32x128xf32> to vector<32x128xbf16>
    %cst_17 = arith.constant dense<0.000000e+00> : vector<96x128xf32>
    %62 = tpu.matmul %2, %61, %cst_17 {dimension_numbers = #tpu.dot_dimension_numbers<[1], [0], [0], [1], [0, 0, 1, 1], [], []>} : vector<96x32xbf16>, vector<32x128xbf16>, vector<96x128xf32> -> vector<96x128xf32>
    %63 = arith.addf %62, %5 : vector<96x128xf32>
    %64 = vector.extract_strided_slice %63 {offsets = [0, 0], sizes = [32, 128], strides = [1, 1]} : vector<96x128xf32> to vector<32x128xf32>
    %65 = vector.extract_strided_slice %59 {offsets = [0, 0], sizes = [32, 128], strides = [1, 1]} : vector<96x128xf32> to vector<32x128xf32>
    %66 = arith.addf %64, %65 : vector<32x128xf32>
    %67 = arith.negf %66 : vector<32x128xf32>
    %68 = math.exp %67 : vector<32x128xf32>
    %cst_18 = arith.constant 1.000000e+00 : f32
    %69 = vector.broadcast %cst_18 : f32 to vector<32x128xf32>
    %70 = arith.addf %69, %68 : vector<32x128xf32>
    %71 = arith.divf %69, %70 : vector<32x128xf32>
    %72 = vector.extract_strided_slice %63 {offsets = [32, 0], sizes = [32, 128], strides = [1, 1]} : vector<96x128xf32> to vector<32x128xf32>
    %73 = vector.extract_strided_slice %59 {offsets = [32, 0], sizes = [32, 128], strides = [1, 1]} : vector<96x128xf32> to vector<32x128xf32>
    %74 = arith.addf %72, %73 : vector<32x128xf32>
    %75 = arith.negf %74 : vector<32x128xf32>
    %76 = math.exp %75 : vector<32x128xf32>
    %cst_19 = arith.constant 1.000000e+00 : f32
    %77 = vector.broadcast %cst_19 : f32 to vector<32x128xf32>
    %78 = arith.addf %77, %76 : vector<32x128xf32>
    %79 = arith.divf %77, %78 : vector<32x128xf32>
    %80 = vector.extract_strided_slice %63 {offsets = [64, 0], sizes = [32, 128], strides = [1, 1]} : vector<96x128xf32> to vector<32x128xf32>
    %81 = vector.extract_strided_slice %59 {offsets = [64, 0], sizes = [32, 128], strides = [1, 1]} : vector<96x128xf32> to vector<32x128xf32>
    %82 = arith.mulf %71, %81 : vector<32x128xf32>
    %83 = arith.addf %80, %82 : vector<32x128xf32>
    %84 = math.tanh %83 : vector<32x128xf32>
    %85 = arith.subf %48, %84 : vector<32x128xf32>
    %86 = arith.mulf %79, %85 : vector<32x128xf32>
    %87 = arith.addf %84, %86 : vector<32x128xf32>
    %88 = arith.truncf %87 : vector<32x128xf32> to vector<32x128xbf16>
    %cst_20 = arith.constant dense<0.000000e+00> : vector<192x128xf32>
    %89 = tpu.matmul %1, %88, %cst_20 {dimension_numbers = #tpu.dot_dimension_numbers<[1], [0], [0], [1], [0, 0, 1, 1], [], []>} : vector<192x32xbf16>, vector<32x128xbf16>, vector<192x128xf32> -> vector<192x128xf32>
    %90 = vector.extract_strided_slice %89 {offsets = [0, 0], sizes = [32, 128], strides = [1, 1]} : vector<192x128xf32> to vector<32x128xf32>
    %91 = arith.truncf %90 : vector<32x128xf32> to vector<32x128xbf16>
    %92 = vector.extract_strided_slice %89 {offsets = [32, 0], sizes = [32, 128], strides = [1, 1]} : vector<192x128xf32> to vector<32x128xf32>
    %93 = arith.truncf %92 : vector<32x128xf32> to vector<32x128xbf16>
    %94 = vector.extract_strided_slice %89 {offsets = [64, 0], sizes = [32, 128], strides = [1, 1]} : vector<192x128xf32> to vector<32x128xf32>
    %95 = arith.truncf %94 : vector<32x128xf32> to vector<32x128xbf16>
    %96 = tpu.concatenate %91, %93, %95 in 1 : vector<32x128xbf16>, vector<32x128xbf16>, vector<32x128xbf16> -> vector<32x384xbf16>
    %97 = vector.extract_strided_slice %89 {offsets = [96, 0], sizes = [96, 128], strides = [1, 1]} : vector<192x128xf32> to vector<96x128xf32>
    %98 = arith.addf %97, %8 : vector<96x128xf32>
    %cst_21 = arith.constant dense<0.000000e+00> : vector<32x128xf32>
    %99 = tpu.matmul %96, %0, %cst_21 {dimension_numbers = #tpu.dot_dimension_numbers<[1], [0], [0], [1], [0, 0, 1, 1], [], []>} : vector<32x384xbf16>, vector<384x128xbf16>, vector<32x128xf32> -> vector<32x128xf32>
    %100 = arith.truncf %99 : vector<32x128xf32> to vector<32x128xbf16>
    %cst_22 = arith.constant dense<0.000000e+00> : vector<96x128xf32>
    %101 = tpu.matmul %2, %100, %cst_22 {dimension_numbers = #tpu.dot_dimension_numbers<[1], [0], [0], [1], [0, 0, 1, 1], [], []>} : vector<96x32xbf16>, vector<32x128xbf16>, vector<96x128xf32> -> vector<96x128xf32>
    %102 = arith.addf %101, %5 : vector<96x128xf32>
    %103 = vector.extract_strided_slice %102 {offsets = [0, 0], sizes = [32, 128], strides = [1, 1]} : vector<96x128xf32> to vector<32x128xf32>
    %104 = vector.extract_strided_slice %98 {offsets = [0, 0], sizes = [32, 128], strides = [1, 1]} : vector<96x128xf32> to vector<32x128xf32>
    %105 = arith.addf %103, %104 : vector<32x128xf32>
    %106 = arith.negf %105 : vector<32x128xf32>
    %107 = math.exp %106 : vector<32x128xf32>
    %cst_23 = arith.constant 1.000000e+00 : f32
    %108 = vector.broadcast %cst_23 : f32 to vector<32x128xf32>
    %109 = arith.addf %108, %107 : vector<32x128xf32>
    %110 = arith.divf %108, %109 : vector<32x128xf32>
    %111 = vector.extract_strided_slice %102 {offsets = [32, 0], sizes = [32, 128], strides = [1, 1]} : vector<96x128xf32> to vector<32x128xf32>
    %112 = vector.extract_strided_slice %98 {offsets = [32, 0], sizes = [32, 128], strides = [1, 1]} : vector<96x128xf32> to vector<32x128xf32>
    %113 = arith.addf %111, %112 : vector<32x128xf32>
    %114 = arith.negf %113 : vector<32x128xf32>
    %115 = math.exp %114 : vector<32x128xf32>
    %cst_24 = arith.constant 1.000000e+00 : f32
    %116 = vector.broadcast %cst_24 : f32 to vector<32x128xf32>
    %117 = arith.addf %116, %115 : vector<32x128xf32>
    %118 = arith.divf %116, %117 : vector<32x128xf32>
    %119 = vector.extract_strided_slice %102 {offsets = [64, 0], sizes = [32, 128], strides = [1, 1]} : vector<96x128xf32> to vector<32x128xf32>
    %120 = vector.extract_strided_slice %98 {offsets = [64, 0], sizes = [32, 128], strides = [1, 1]} : vector<96x128xf32> to vector<32x128xf32>
    %121 = arith.mulf %110, %120 : vector<32x128xf32>
    %122 = arith.addf %119, %121 : vector<32x128xf32>
    %123 = math.tanh %122 : vector<32x128xf32>
    %124 = arith.subf %87, %123 : vector<32x128xf32>
    %125 = arith.mulf %118, %124 : vector<32x128xf32>
    %126 = arith.addf %123, %125 : vector<32x128xf32>
    %c0_25 = arith.constant 0 : index
    %c0_26 = arith.constant 0 : index
    %127 = vector.load %arg6[%c0_25, %c0_26] : memref<32x128xf32, #tpu.memory_space<vmem>>, vector<32x128xf32>
    tpu.vector_store %arg6[%c0_25, %c0_26], %126 {strides = array<i32>} : memref<32x128xf32, #tpu.memory_space<vmem>>, vector<32x128xf32>,
    return
  }
}

</mosaic_0001>

<bundles_post_ra>
// kernel: mul.3
= control target key start
LH: loop header
LB: loop body
LE: loop exit
PB: predicated region body
PF: predicated region fallthrough
CT: control target
= control target key end

     0   :  { %s34_s0 = inlined_call_operand.vmem [shape: f32[192], index: 0, kind: input, shape index: {}]   ;;  %s35_s1 = inlined_call_operand.vmem [shape: f32[192], index: 1, kind: input, shape index: {}]   ;;  %s36_s2 = inlined_call_operand.vmem [shape: f32[192], index: 2, kind: output, shape index: {}]  }
   0x1   :  { %v3_v0 = vld [vmem:[%s34_s0] sm:$0x3] }
   0x2   :  { %v4_v1 = vld [vmem:[%s35_s1] sm:$0x3] }
   0x3   :  { %v7_v2 = vmul.f32 %v4_v1, %v3_v0 }
   0x5   :  { %9 = vst [vmem:[%s36_s2] sm:$0x3] %v7_v2 }

// kernel: gated_graph_recurrent_layer.1
= control target key start
LH: loop header
LB: loop body
LE: loop exit
PB: predicated region body
PF: predicated region fallthrough
CT: control target
= control target key end

     0   :  { %vm318_vm0 = vcmask 261120   ;;  %v2246_v14 = vmov 0   ;;  %s3353_s0 = inlined_call_operand.vmem [shape: f32[32,128], index: 0, kind: input, shape index: {}]   ;;  %s3354_s2 = inlined_call_operand.vmem [shape: bf16[192,32], index: 2, kind: input, shape index: {}]   ;;  %s3355_s5 = inlined_call_operand.vmem [shape: f32[96,1], index: 5, kind: input, shape index: {}]   ;;  %s3356_s4 = inlined_call_operand.vmem [shape: f32[96,1], index: 4, kind: input, shape index: {}]   ;;  %s3357_s1 = inlined_call_operand.vmem [shape: bf16[384,128], index: 1, kind: input, shape index: {}]   ;;  %s3358_s3 = inlined_call_operand.vmem [shape: bf16[96,32], index: 3, kind: input, shape index: {}]   ;;  %s3359_s6 = inlined_call_operand.vmem [shape: f32[32,128], index: 6, kind: output, shape index: {}]  }
   0x1   :  { %v2285_v0 = vld [vmem:[%s3353_s0 + $0x10] sm:$0xff]  ;;  %v2290_v1 = vld [vmem:[%s3353_s0 + $0x18] sm:$0xff]  ;;  %v2295_v2 = vld [vmem:[%s3353_s0] sm:$0xff]  ;;  %2098 = vset.pattern.permute.xlu1 %v2246_v14  ;;  %2097 = vset.pattern.permute.xlu0 %v2246_v14 }
   0x2   :  { %v257_v3 = vpack.c.bf16 %v2290_v1, %v2285_v0  ;;  %v2302_v4 = vld [vmem:[%s3353_s0 + $0x8] sm:$0xff]  ;;  %v2309_v6 = vld [vmem:[%s3354_s2] sm:$0xff]  ;;  %v2064_v8 = vld [vmem:[%s3354_s2 + $0x10] sm:$0xff]  ;;  %2099 = vset.pattern.permute.xlu2 %v2246_v14 }
   0x3   :  { %v256_v5 = vpack.c.bf16 %v2302_v4, %v2295_v2  ;;  %v2063_v7 = vld [vmem:[%s3354_s2 + $0x8] sm:$0xff]  ;;  %v2065_v9 = vld [vmem:[%s3354_s2 + $0x18] sm:$0xff]  ;;  %v2066_v10 = vld [vmem:[%s3354_s2 + $0x20] sm:$0xff] }
   0x4   :  { %361 = vmatpush.bf16.msra.mxu0 %v257_v3  ;;  %v2332_v11 = vld [vmem:[%s3357_s1 + $0x78] sm:$0xff]  ;;  %v182_v12 = vld [vmem:[%s3355_s5 + $0x10] sm:$0xff]  ;;  %v2357_v18 = vld [vmem:[%s3354_s2 + $0x28] sm:$0xff] }
   0x5   :  { %v110_v13 = vld [vmem:[%s3356_s4 + $0x10] sm:$0xff]  ;;  %v2343_v15 = vld [vmem:[%s3357_s1 + $0x38] sm:$0xff]  ;;  %204 = vperm.xlu1 %2098, %v182_v12   ;;  %v181_v20 = vld [vmem:[%s3355_s5 + $0x8] sm:$0xff] }
   0x6   :  { %132 = vperm.xlu0 %2097, %v110_v13   ;;  %628 = vmatpush.bf16.msra.mxu1 %v2343_v15  ;;  %v183_v16 = vld [vmem:[%s3355_s5 + $0x18] sm:$0xff]  ;;  %v2362_v19 = vld [vmem:[%s3357_s1 + $0x30] sm:$0xff]  ;;  %v180_v21 = vld [vmem:[%s3355_s5] sm:$0xff] }
   0x7   :  { %1089 = vmatpush.bf16.msra.mxu3 %v2343_v15  ;;  %v111_v17 = vld [vmem:[%s3356_s4 + $0x18] sm:$0xff]  ;;  %v2376_v22 = vld [vmem:[%s3357_s1 + $0x28] sm:$0xff]  ;;  %v2381_v23 = vld [vmem:[%s3357_s1 + $0x70] sm:$0xff] }
   0x8   :  { %362 = vmatpush.bf16.msra.mxu0 %v256_v5  ;;  %v2389_v24 = vld [vmem:[%s3357_s1 + $0x20] sm:$0xff]  ;;  %v2397_v25 = vld [vmem:[%s3357_s1 + $0x18] sm:$0xff]  ;;  %v2402_v26 = vld [vmem:[%s3354_s2 + $0x30] sm:$0xff] }
   0x9   :  { %v2409_v27 = vld [vmem:[%s3357_s1 + $0x10] sm:$0xff]  ;;  %v115_v28 = vld [vmem:[%s3356_s4 + $0x38] sm:$0xff]  ;;  %v2421_v29 = vld [vmem:[%s3357_s1 + $0x8] sm:$0xff] }
   0xa   :  { %629 = vmatpush.bf16.msra.mxu1 %v2362_v19  ;;  %v2428_v30 = vld [vmem:[%s3357_s1] sm:$0xff]  ;;  %v2436_v31 = vld [vmem:[%s3354_s2 + $0x38] sm:$0xff]  ;;  %v2450_v34 = vld [vmem:[%s3357_s1 + $0x68] sm:$0xff] }
   0xb   :  { %1840 = vmatmul.msk.bf16.vlgmr.msra.gmra.mxu0 %vm318_vm0, %v2309_v6  ;;  %1090 = vmatpush.bf16.msra.mxu3 %v2362_v19  ;;  %v112_v32 = vld [vmem:[%s3356_s4 + $0x20] sm:$0xff]  ;;  %v185_v35 = vld [vmem:[%s3355_s5 + $0x28] sm:$0xff]  ;;  %v114_v38 = vld [vmem:[%s3356_s4 + $0x30] sm:$0xff] }
   0xc   :  { %647 = vmatpush.bf16.msrb.mxu0 %v2332_v11  ;;  %v108_v33 = vld [vmem:[%s3356_s4] sm:$0xff]  ;;  %v109_v36 = vld [vmem:[%s3356_s4 + $0x8] sm:$0xff]  ;;  %v186_v40 = vld [vmem:[%s3355_s5 + $0x30] sm:$0xff] }
   0xd   :  { %209 = vperm.xlu1 %2098, %v183_v16   ;;  %122 = vperm.xlu2 %2099, %v108_v33   ;;  %v2463_v37 = vld [vmem:[%s3354_s2 + $0x40] sm:$0xff]  ;;  %v187_v41 = vld [vmem:[%s3355_s5 + $0x38] sm:$0xff]  ;;  %v118_v49 = vld [vmem:[%s3356_s4 + $0x50] sm:$0xff] }
   0xe   :  { %137 = vperm.xlu0 %2097, %v111_v17   ;;  %630 = vmatpush.bf16.msra.mxu1 %v2376_v22  ;;  %v2479_v48 = vld [vmem:[%s3357_s1 + $0x60] sm:$0xff]  ;;  %v2490_v51 = vld [vmem:[%s3357_s1 + $0xb8] sm:$0xff]  ;;  %v2495_v52 = vld [vmem:[%s3354_s2 + $0x48] sm:$0xff] }
   0xf   :  { %1091 = vmatpush.bf16.msra.mxu3 %v2376_v22  ;;  %v184_v50 = vld [vmem:[%s3355_s5 + $0x20] sm:$0xff]  ;;  %v2503_v54 = vld [vmem:[%s3357_s1 + $0x58] sm:$0xff]  ;;  %v2508_v55 = vld [vmem:[%s3357_s1 + $0xb0] sm:$0xff] }
  0x10   :  { %648 = vmatpush.bf16.msrb.mxu0 %v2381_v23  ;;  %v189_v56 = vld [vmem:[%s3355_s5 + $0x48] sm:$0xff]  ;;  %v2521_v57 = vld [vmem:[%s3357_s1 + $0x50] sm:$0xff]  ;;  %v2539_v63 = vld [vmem:[%s3357_s1 + $0xa0] sm:$0xff] }
  0x11   :  { %v2526_v58 = vld [vmem:[%s3357_s1 + $0xa8] sm:$0xff]  ;;  %v2560_v12 = vld [vmem:[%s3354_s2 + $0x50] sm:$0xff]  ;;  %v191_v17 = vld [vmem:[%s3355_s5 + $0x58] sm:$0xff] }
  0x12   :  { %631 = vmatpush.bf16.msra.mxu1 %v2389_v24  ;;  %v2534_v62 = vld [vmem:[%s3357_s1 + $0x48] sm:$0xff]  ;;  %v2569_v14 = vld [vmem:[%s3357_s1 + $0x90] sm:$0xff] }
  0x13   :  { %1092 = vmatpush.bf16.msra.mxu3 %v2389_v24  ;;  %v190_v16 = vld [vmem:[%s3355_s5 + $0x50] sm:$0xff] }
  0x14   :  { %649 = vmatpush.bf16.msrb.mxu0 %v2450_v34 }
  0x15   :  { %199 = vperm.xlu1 %2098, %v181_v20   ;;  %127 = vperm.xlu2 %2099, %v109_v36  }
  0x16   :  { %194 = vperm.xlu0 %2097, %v180_v21   ;;  %632 = vmatpush.bf16.msra.mxu1 %v2397_v25  ;;  %v2591_v21 = vld [vmem:[%s3357_s1 + $0x80] sm:$0xff] }
  0x17   :  { %1093 = vmatpush.bf16.msra.mxu3 %v2397_v25 }
  0x18   :  { %650 = vmatpush.bf16.msrb.mxu0 %v2479_v48 }
  0x1a   :  { %633 = vmatpush.bf16.msra.mxu1 %v2409_v27 }
  0x1b   :  { %1841 = vmatmul.msk.bf16.gmra.mxu0 %vm318_vm0, %v2063_v7  ;;  %1094 = vmatpush.bf16.msra.mxu3 %v2409_v27  ;;  %v113_v7 = vld [vmem:[%s3356_s4 + $0x28] sm:$0xff] }
  0x1c   :  { %651 = vmatpush.bf16.msrb.mxu0 %v2503_v54 }
  0x1d   :  { %152 = vperm.xlu2 %2099, %v114_v38   ;;  %224 = vperm.xlu1 %2098, %v186_v40  }
  0x1e   :  { %157 = vperm.xlu0 %2097, %v115_v28   ;;  %634 = vmatpush.bf16.msra.mxu1 %v2421_v29  ;;  %v188_v28 = vld [vmem:[%s3355_s5 + $0x40] sm:$0xff] }
  0x1f   :  { %1095 = vmatpush.bf16.msra.mxu3 %v2421_v29 }
  0x20   :  { %652 = vmatpush.bf16.msrb.mxu0 %v2521_v57 }
  0x22   :  { %635 = vmatpush.bf16.msra.mxu1 %v2428_v30 }
  0x23   :  { %1096 = vmatpush.bf16.msra.mxu3 %v2428_v30 }
  0x24   :  { %653 = vmatpush.bf16.msrb.mxu0 %v2534_v62 }
  0x25   :  { %229 = vperm.xlu2 %2099, %v187_v41   ;;  %147 = vperm.xlu1 %2098, %v113_v7  }
  0x26   :  { %142 = vperm.xlu0 %2097, %v112_v32   ;;  %666 = vmatpush.bf16.msrb.mxu1 %v2490_v51 }
  0x27   :  { %1108 = vmatpush.bf16.msrb.mxu3 %v2332_v11 }
  0x2a   :  { %667 = vmatpush.bf16.msrb.mxu1 %v2508_v55 }
  0x2b   :  { %1842 = vmatmul.msk.bf16.gmra.mxu0 %vm318_vm0, %v2064_v8  ;;  %1109 = vmatpush.bf16.msrb.mxu3 %v2381_v23 }
  0x2d   :  { %214 = vperm.xlu2 %2099, %v184_v50   ;;  %244 = vperm.xlu1 %2098, %v190_v16  }
  0x2e   :  { %219 = vperm.xlu0 %2097, %v185_v35   ;;  %668 = vmatpush.bf16.msrb.mxu1 %v2526_v58 }
  0x2f   :  { %1110 = vmatpush.bf16.msrb.mxu3 %v2450_v34 }
  0x32   :  { %669 = vmatpush.bf16.msrb.mxu1 %v2539_v63 }
  0x33   :  { %1111 = vmatpush.bf16.msrb.mxu3 %v2479_v48 }
  0x35   :  { %249 = vperm.xlu2 %2099, %v191_v17  }
  0x36   :  { %172 = vperm.xlu0 %2097, %v118_v49  }
  0x37   :  { %1112 = vmatpush.bf16.msrb.mxu3 %v2503_v54 }
  0x3b   :  { %1843 = vmatmul.msk.bf16.gmra.mxu0 %vm318_vm0, %v2065_v9  ;;  %1113 = vmatpush.bf16.msrb.mxu3 %v2521_v57  ;;  %v2550_v9 = vld [vmem:[%s3357_s1 + $0x40] sm:$0xff] }
  0x3c   :  { %654 = vmatpush.bf16.msrb.mxu0 %v2550_v9 }
  0x3d   :  { %234 = vperm.xlu2 %2099, %v188_v28  }
  0x3e   :  { %239 = vperm.xlu0 %2097, %v189_v56  }
  0x3f   :  { %1114 = vmatpush.bf16.msrb.mxu3 %v2534_v62 }
  0x40   :  { %1502 = vmatpush.bf16.msra.mxu0 %v2343_v15  ;;  %v2584_v15 = vld [vmem:[%s3357_s1 + $0x88] sm:$0xff] }
  0x43   :  { %1115 = vmatpush.bf16.msrb.mxu3 %v2550_v9 }
  0x44   :  { %1503 = vmatpush.bf16.msra.mxu0 %v2362_v19  ;;  %v2598_v19 = vld [vmem:[%s3354_s2 + $0x58] sm:$0xff] }
  0x48   :  { %1504 = vmatpush.bf16.msra.mxu0 %v2376_v22 }
  0x4b   :  { %1844 = vmatmul.msk.bf16.gmra.mxu0 %vm318_vm0, %v2066_v10  ;;  %v2555_v10 = vld [vmem:[%s3357_s1 + $0x98] sm:$0xff] }
  0x4c   :  { %670 = vmatpush.bf16.msrb.mxu1 %v2555_v10  ;;  %1505 = vmatpush.bf16.msra.mxu0 %v2389_v24 }
  0x50   :  { %671 = vmatpush.bf16.msrb.mxu1 %v2569_v14  ;;  %1506 = vmatpush.bf16.msra.mxu0 %v2397_v25 }
  0x54   :  { %672 = vmatpush.bf16.msrb.mxu1 %v2584_v15  ;;  %1507 = vmatpush.bf16.msra.mxu0 %v2409_v27 }
  0x58   :  { %673 = vmatpush.bf16.msrb.mxu1 %v2591_v21  ;;  %1508 = vmatpush.bf16.msra.mxu0 %v2421_v29 }
  0x5b   :  { %1845 = vmatmul.msk.bf16.gmra.mxu0 %vm318_vm0, %v2357_v18 }
  0x5c   :  { %1509 = vmatpush.bf16.msra.mxu0 %v2428_v30 }
  0x6b   :  { %1846 = vmatmul.msk.bf16.gmra.mxu0 %vm318_vm0, %v2402_v26 }
  0x7b   :  { %1847 = vmatmul.msk.bf16.gmra.mxu0 %vm318_vm0, %v2436_v31 }
  0x88   :  { %v364_v39 = vpop.f32.mrf.mxu0 }
  0x89   :  { %v424_v42 = vpack.c.bf16 %v364_v39, %v364_v39 }
  0x8b   :  { %1848 = vmatmul.msk.bf16.gmra.mxu0 %vm318_vm0, %v2463_v37  ;;  %v440_v45 = vunpack.c.l.b16 %v424_v42 }
  0x90   :  { %v366_v43 = vpop.f32.mrf.mxu0 }
  0x91   :  { %v425_v44 = vpack.c.bf16 %v366_v43, %v366_v43 }
  0x93   :  { %v441_v46 = vunpack.c.l.b16 %v425_v44 }
  0x95   :  { %v444_v47 = vpack.c.b16 %v441_v46, %v440_v45 }
  0x97   :  { %636 = vmatmul.bf16.vlgmr.msra.gmra.mxu1 %v444_v47 }
  0x98   :  { %v369_v53 = vpop.f32.mrf.mxu0 }
  0x99   :  { %v426_v59 = vpack.c.bf16 %v369_v53, %v369_v53 }
  0x9b   :  { %1849 = vmatmul.msk.bf16.gmra.mxu0 %vm318_vm0, %v2495_v52  ;;  %v442_v3 = vunpack.c.l.b16 %v426_v59 }
  0xa0   :  { %v371_v60 = vpop.f32.mrf.mxu0 }
  0xa1   :  { %v427_v61 = vpack.c.bf16 %v371_v60, %v371_v60 }
  0xa3   :  { %v443_v5 = vunpack.c.l.b16 %v427_v61 }
  0xa5   :  { %v445_v8 = vpack.c.b16 %v443_v5, %v442_v3 }
  0xa7   :  { %641 = vmatmul.bf16.gmra.mxu1 %v445_v8 }
  0xa8   :  { %v374_v13 = vpop.f32.mrf.mxu0 }
  0xa9   :  { %v428_v33 = vpack.c.bf16 %v374_v13, %v374_v13 }
  0xab   :  { %1850 = vmatmul.msk.bf16.gmra.mxu0 %vm318_vm0, %v2560_v12  ;;  %v452_v36 = vunpack.c.l.b16 %v428_v33 }
  0xb0   :  { %v376_v20 = vpop.f32.mrf.mxu0 }
  0xb1   :  { %v429_v24 = vpack.c.bf16 %v376_v20, %v376_v20 }
  0xb3   :  { %v453_v35 = vunpack.c.l.b16 %v429_v24 }
  0xb5   :  { %v456_v39 = vpack.c.b16 %v453_v35, %v452_v36 }
  0xb8   :  { %v379_v32 = vpop.f32.mrf.mxu0 }
  0xb9   :  { %v430_v42 = vpack.c.bf16 %v379_v32, %v379_v32 }
  0xbb   :  { %1851 = vmatmul.msk.bf16.gmra.mxu0 %vm318_vm0, %v2598_v19  ;;  %v454_v30 = vunpack.c.l.b16 %v430_v42 }
  0xc0   :  { %v381_v22 = vpop.f32.mrf.mxu0 }
  0xc1   :  { %v431_v41 = vpack.c.bf16 %v381_v22, %v381_v22 }
  0xc3   :  { %v455_v29 = vunpack.c.l.b16 %v431_v41 }
  0xc5   :  { %v457_v47 = vpack.c.b16 %v455_v29, %v454_v30  ;;  %v119_v30 = vld [vmem:[%s3356_s4 + $0x58] sm:$0xff] }
  0xc6   :  { %177 = vperm.xlu1 %2098, %v119_v30  }
  0xc8   :  { %v384_v38 = vpop.f32.mrf.mxu0 }
  0xc9   :  { %v432_v25 = vpack.c.bf16 %v384_v38, %v384_v38 }
  0xcb   :  { %655 = vmatmul.bf16.vlgmr.msrb.gmra.mxu0 %v456_v39  ;;  %v464_v43 = vunpack.c.l.b16 %v432_v25 }
  0xcc   :  { %1521 = vmatpush.bf16.msrb.mxu0 %v2332_v11 }
  0xd0   :  { %v386_v40 = vpop.f32.mrf.mxu0  ;;  %1522 = vmatpush.bf16.msrb.mxu0 %v2381_v23 }
  0xd1   :  { %v433_v27 = vpack.c.bf16 %v386_v40, %v386_v40 }
  0xd3   :  { %v465_v44 = vunpack.c.l.b16 %v433_v27 }
  0xd4   :  { %1523 = vmatpush.bf16.msrb.mxu0 %v2450_v34 }
  0xd5   :  { %v468_v45 = vpack.c.b16 %v465_v44, %v464_v43 }
  0xd7   :  { %674 = vmatmul.bf16.vlgmr.msrb.gmra.mxu1 %v468_v45  ;;  %v2644_v45 = vld [vmem:[%s3358_s3] sm:$0xff] }
  0xd8   :  { %v389_v46 = vpop.f32.mrf.mxu0  ;;  %1524 = vmatpush.bf16.msrb.mxu0 %v2479_v48 }
  0xd9   :  { %v434_v11 = vpack.c.bf16 %v389_v46, %v389_v46  ;;  %v116_v46 = vld [vmem:[%s3356_s4 + $0x40] sm:$0xff] }
  0xda   :  { %162 = vperm.xlu1 %2098, %v116_v46  }
  0xdb   :  { %660 = vmatmul.bf16.gmra.mxu0 %v457_v47  ;;  %v466_v50 = vunpack.c.l.b16 %v434_v11  ;;  %v2657_v47 = vld [vmem:[%s3358_s3 + $0x8] sm:$0xff]  ;;  %v2664_v11 = vld [vmem:[%s3358_s3 + $0x10] sm:$0xff] }
  0xdc   :  { %1525 = vmatpush.bf16.msrb.mxu0 %v2503_v54 }
  0xe0   :  { %v391_v23 = vpop.f32.mrf.mxu0  ;;  %1526 = vmatpush.bf16.msrb.mxu0 %v2521_v57 }
  0xe1   :  { %v435_v49 = vpack.c.bf16 %v391_v23, %v391_v23  ;;  %v117_v23 = vld [vmem:[%s3356_s4 + $0x48] sm:$0xff] }
  0xe2   :  { %167 = vperm.xlu2 %2099, %v117_v23  }
  0xe3   :  { %v467_v53 = vunpack.c.l.b16 %v435_v49  ;;  %v2674_v49 = vld [vmem:[%s3358_s3 + $0x18] sm:$0xff] }
  0xe4   :  { %1527 = vmatpush.bf16.msrb.mxu0 %v2534_v62 }
  0xe5   :  { %v469_v34 = vpack.c.b16 %v467_v53, %v466_v50  ;;  %v2681_v50 = vld [vmem:[%s3358_s3 + $0x20] sm:$0xff]  ;;  %v2688_v53 = vld [vmem:[%s3358_s3 + $0x28] sm:$0xff] }
  0xe7   :  { %679 = vmatmul.bf16.gmra.mxu1 %v469_v34  ;;  %v2692_v34 = vpop.permute.xlu2 %122 }
  0xe8   :  { %v2616_v56 = vpop.f32.mrf.mxu0  ;;  %1528 = vmatpush.bf16.msrb.mxu0 %v2550_v9 }
  0xf0   :  { %v2619_v48 = vpop.f32.mrf.mxu0 }
  0xf8   :  { %v2621_v59 = vpop.f32.mrf.mxu0 }
 0x100   :  { %v2623_v54 = vpop.f32.mrf.mxu0 }
 0x108   :  { %v2625_v60 = vpop.f32.mrf.mxu0 }
 0x110   :  { %v2627_v57 = vpop.f32.mrf.mxu0 }
 0x114   :  { %v637_v5 = vpop.f32.mrf.mxu1 }
 0x118   :  { %v2629_v61 = vpop.f32.mrf.mxu0 }
 0x11c   :  { %v639_v8 = vpop.f32.mrf.mxu1 }
 0x120   :  { %v2631_v3 = vpop.f32.mrf.mxu0 }
 0x124   :  { %v642_v16 = vpop.f32.mrf.mxu1 }
 0x128   :  { %v2633_v62 = vpop.f32.mrf.mxu0 }
 0x12c   :  { %v644_v20 = vpop.f32.mrf.mxu1 }
 0x130   :  { %v2635_v7 = vpop.f32.mrf.mxu0 }
 0x138   :  { %v2637_v9 = vpop.f32.mrf.mxu0 }
 0x140   :  { %v2639_v13 = vpop.f32.mrf.mxu0 }
 0x148   :  { %v656_v17 = vpop.f32.mrf.mxu0 }
 0x149   :  { %v657_v27 = vadd.f32 %v656_v17, %v637_v5  ;;  %v2694_v5 = vpop.permute.xlu0 %132 }
 0x14a   :  { %3388 = vst [vmem:[#allocation2_spill] sm:$0xff] %v2694_v5 }
 0x150   :  { %v658_v28 = vpop.f32.mrf.mxu0 }
 0x151   :  { %v659_v25 = vadd.f32 %v658_v28, %v639_v8  ;;  %v2696_v8 = vpop.permute.xlu2 %127 }
 0x154   :  { %v675_v32 = vpop.f32.mrf.mxu1 }
 0x155   :  { %v676_v44 = vadd.f32 %v675_v32, %v657_v27 }
 0x158   :  { %v661_v24 = vpop.f32.mrf.mxu0 }
 0x159   :  { %v662_v36 = vadd.f32 %v661_v24, %v642_v16  ;;  %v2698_v16 = vpop.permute.xlu0 %137  ;;  %v2700_v17 = vpop.permute.xlu2 %152 }
 0x15a   :  { %3389 = vst [vmem:[#allocation3_spill] sm:$0xff] %v2698_v16 }
 0x15c   :  { %v677_v22 = vpop.f32.mrf.mxu1 }
 0x15d   :  { %v678_v42 = vadd.f32 %v677_v22, %v659_v25 }
 0x15f   :  { %v685_v29 = vpack.c.bf16 %v678_v42, %v676_v44 }
 0x160   :  { %v663_v35 = vpop.f32.mrf.mxu0 }
 0x161   :  { %v664_v38 = vadd.f32 %v663_v35, %v644_v20  ;;  %v2702_v20 = vpop.permute.xlu1 %204  ;;  %v2704_v28 = vpop.permute.xlu0 %194 }
 0x162   :  { %3390 = vst [vmem:[#allocation4_spill] sm:$0xff] %v2702_v20  ;;  %v2706_v32 = vpop.permute.xlu2 %229  ;;  %v472_v24 = vadd.f32 %v2616_v56, %v2704_v28  ;;  %v474_v56 = vadd.f32 %v2621_v59, %v2702_v20 }
 0x163   :  { %3391 = vst [vmem:[#allocation5_spill] sm:$0xff] %v2706_v32 }
 0x164   :  { %v680_v33 = vpop.f32.mrf.mxu1 }
 0x165   :  { %v681_v40 = vadd.f32 %v680_v33, %v662_v36 }
 0x169   :  { %v2711_v36 = vpop.permute.xlu1 %209  ;;  %v2723_v30 = vpop.permute.xlu0 %157 }
 0x16a   :  { %v2713_v25 = vpop.permute.xlu2 %214  ;;  %3393 = vst [vmem:[#allocation7_spill] sm:$0xff] %v2723_v30  ;;  %v475_v59 = vadd.f32 %v2623_v54, %v2711_v36 }
 0x16c   :  { %v682_v39 = vpop.f32.mrf.mxu1 }
 0x16d   :  { %v683_v41 = vadd.f32 %v682_v39, %v664_v38 }
 0x16f   :  { %v686_v43 = vpack.c.bf16 %v683_v41, %v681_v40 }
 0x171   :  { %741 = vmatpush.bf16.msra.mxu1 %v686_v43  ;;  %v2715_v27 = vpop.permute.xlu1 %199 }
 0x172   :  { %3392 = vst [vmem:[#allocation6_spill] sm:$0xff] %v2715_v27  ;;  %v2725_v46 = vpop.permute.xlu2 %249 }
 0x175   :  { %742 = vmatpush.bf16.msra.mxu1 %v685_v29  ;;  %v473_v29 = vadd.f32 %v2619_v48, %v2715_v27 }
 0x178   :  { %1972 = vmatmul.msk.bf16.vlgmr.msra.gmra.mxu1 %vm318_vm0, %v2644_v45 }
 0x188   :  { %1973 = vmatmul.msk.bf16.gmra.mxu1 %vm318_vm0, %v2657_v47 }
 0x198   :  { %1974 = vmatmul.msk.bf16.gmra.mxu1 %vm318_vm0, %v2664_v11 }
 0x1a8   :  { %1975 = vmatmul.msk.bf16.gmra.mxu1 %vm318_vm0, %v2674_v49 }
 0x1b8   :  { %1976 = vmatmul.msk.bf16.gmra.mxu1 %vm318_vm0, %v2681_v50 }
 0x1c8   :  { %1977 = vmatmul.msk.bf16.gmra.mxu1 %vm318_vm0, %v2688_v53 }
 0x1f5   :  { %v744_v22 = vpop.f32.mrf.mxu1 }
 0x1f6   :  { %v745_v33 = vadd.f32 %v744_v22, %v2692_v34 }
 0x1f8   :  { %v774_v35 = vadd.f32 %v745_v33, %v472_v24 }
 0x1fa   :  { %v1978_v38 = vmul.f32 -1.442695, %v774_v35 }
 0x1fc   :  { %2100 = vpow2.f32 %v1978_v38 }
 0x1fd   :  { %v746_v39 = vpop.f32.mrf.mxu1 }
 0x1fe   :  { %v747_v42 = vadd.f32 %v746_v39, %v2696_v8 }
 0x200   :  { %v775_v22 = vadd.f32 %v747_v42, %v473_v29  ;;  %v2732_v42 = vpop.permute.xlu0 %142 }
 0x201   :  { %3394 = vst [vmem:[#allocation8_spill] sm:$0xff] %v2732_v42 }
 0x202   :  { %v2101_v40 = vpop.eup %2100  ;;  %v1979_v38 = vmul.f32 -1.442695, %v775_v22 }
 0x203   :  { %v790_v41 = vadd.f32 1.0, %v2101_v40  ;;  %v2729_v40 = vpop.permute.xlu1 %224 }
 0x205   :  { %2102 = vrcp.f32 %v790_v41  ;;  %v749_v43 = vpop.f32.mrf.mxu1  ;;  %v805_v27 = vand.u32 2147483648, %v790_v41  ;;  %vm799_vm2 = vweird.f32 %v790_v41 }
 0x206   :  { %v750_v44 = vadd.f32 %v749_v43, %v2694_v5 }
 0x208   :  { %v776_v23 = vadd.f32 %v750_v44, %v474_v56  ;;  %v803_v56 = vand.u32 2147483647, %v790_v41  ;;  %v2734_v44 = vpop.permute.xlu2 %234 }
 0x20a   :  { %v1980_v24 = vmul.f32 -1.442695, %v776_v23  ;;  %vm804_vm4 = vcmp.eq.f32.partialorder %v803_v56, 8.507059e+37  ;;  %v2747_v56 = vpop.permute.xlu0 %219 }
 0x20b   :  { %v2103_v33 = vpop.eup %2102  ;;  %3396 = vst [vmem:[#allocation10_spill] sm:$0xff] %v2747_v56 }
 0x20c   :  { %2104 = vpow2.f32 %v1980_v24  ;;  %v795_v35 = vmul.f32 %v2103_v33, %v790_v41  ;;  %vm800_vm1 = vweird.f32 %v2103_v33  ;;  %v806_v24 = vor.u32 1.1754944e-38, %v805_v27 }
 0x20d   :  { %v751_v39 = vpop.f32.mrf.mxu1  ;;  %2106 = vpow2.f32 %v1979_v38  ;;  %vm801_vm3 = vmor %vm799_vm2, %vm800_vm1  ;;  %v2740_v38 = vpop.permute.xlu1 %147 }
 0x20e   :  { %v752_v43 = vadd.f32 %v751_v39, %v2698_v16  ;;  %v796_v48 = vsub.f32 1.0, %v795_v35  ;;  %v480_v35 = vadd.f32 %v2633_v62, %v2734_v44  ;;  %3395 = vst [vmem:[#allocation9_spill] sm:$0xff] %v2740_v38 }
 0x210   :  { %v777_v5 = vadd.f32 %v752_v43, %v475_v59  ;;  %v797_v20 = vmul.f32 %v2103_v33, %v796_v48  ;;  %v476_v48 = vadd.f32 %v2625_v60, %v2713_v25 }
 0x212   :  { %v2105_v29 = vpop.eup %2104  ;;  %v1981_v23 = vmul.f32 -1.442695, %v777_v5  ;;  %v798_v22 = vadd.f32 %v2103_v33, %v797_v20 }
 0x213   :  { %v792_v54 = vadd.f32 1.0, %v2105_v29  ;;  %v2107_v41 = vpop.eup %2106 }
 0x214   :  { %2108 = vpow2.f32 %v1981_v23  ;;  %v802_v39 = vsel %vm801_vm3, %v2103_v33, %v798_v22  ;;  %v2745_v16 = vadd.f32 1.0, %v2107_v41 }
 0x215   :  { %2110 = vrcp.f32 %v792_v54  ;;  %v754_v59 = vpop.f32.mrf.mxu1  ;;  %v807_v43 = vsel %vm804_vm4, %v806_v24, %v802_v39  ;;  %v477_v24 = vadd.f32 %v2627_v57, %v2747_v56  ;;  %v833_v41 = vand.u32 2147483647, %v792_v54 }
 0x216   :  { %v755_v5 = vadd.f32 %v754_v59, %v2732_v42  ;;  %v2743_v20 = vmul.f32 %v807_v43, %v480_v35  ;;  %v835_v59 = vand.u32 2147483648, %v792_v54  ;;  %v2753_v43 = vpop.permute.xlu1 %244  ;;  %vm829_vm6 = vweird.f32 %v792_v54 }
 0x217   :  { %3397 = vst [vmem:[#allocation11_spill] sm:$0xff] %v2753_v43  ;;  %v482_v57 = vadd.f32 %v2637_v9, %v2753_v43  ;;  %vm834_vm8 = vcmp.eq.f32.partialorder %v833_v41, 8.507059e+37  ;;  %vm814_vm14 = vweird.f32 %v2745_v16 }
 0x218   :  { %v854_v27 = vadd.f32 %v755_v5, %v476_v48 }
 0x21a   :  { %v2109_v29 = vpop.eup %2108  ;;  %v1982_v62 = vmul.f32 -1.442695, %v854_v27 }
 0x21b   :  { %v2111_v33 = vpop.eup %2110  ;;  %v793_v23 = vadd.f32 1.0, %v2109_v29 }
 0x21c   :  { %2112 = vpow2.f32 %v1982_v62  ;;  %v825_v22 = vmul.f32 %v2111_v33, %v792_v54  ;;  %vm830_vm5 = vweird.f32 %v2111_v33 }
 0x21d   :  { %2114 = vrcp.f32 %v793_v23  ;;  %v756_v60 = vpop.f32.mrf.mxu1  ;;  %vm831_vm7 = vmor %vm829_vm6, %vm830_vm5  ;;  %v848_v41 = vand.u32 2147483647, %v793_v23  ;;  %vm844_vm10 = vweird.f32 %v793_v23 }
 0x21e   :  { %2116 = vrcp.f32 %v2745_v16  ;;  %v757_v35 = vadd.f32 %v756_v60, %v2740_v38  ;;  %v826_v39 = vsub.f32 1.0, %v825_v22  ;;  %v836_v60 = vor.u32 1.1754944e-38, %v835_v59 }
 0x21f   :  { %vm849_vm12 = vcmp.eq.f32.partialorder %v848_v41, 8.507059e+37 }
 0x220   :  { %v855_v48 = vadd.f32 %v757_v35, %v477_v24  ;;  %v827_v5 = vmul.f32 %v2111_v33, %v826_v39  ;;  %v478_v35 = vadd.f32 %v2629_v61, %v2729_v40 }
 0x222   :  { %v2113_v27 = vpop.eup %2112  ;;  %v1983_v29 = vmul.f32 -1.442695, %v855_v48  ;;  %v828_v62 = vadd.f32 %v2111_v33, %v827_v5 }
 0x223   :  { %v2115_v42 = vpop.eup %2114  ;;  %v2757_v56 = vadd.f32 1.0, %v2113_v27  ;;  %v850_v27 = vand.u32 2147483648, %v793_v23 }
 0x224   :  { %v2759_v22 = vpop.eup %2116  ;;  %2118 = vpow2.f32 %v1983_v29  ;;  %v832_v38 = vsel %vm831_vm7, %v2111_v33, %v828_v62  ;;  %v840_v24 = vmul.f32 %v2115_v42, %v793_v23  ;;  %vm845_vm9 = vweird.f32 %v2115_v42 }
 0x225   :  { %v759_v39 = vpop.f32.mrf.mxu1  ;;  %v837_v48 = vsel %vm834_vm8, %v836_v60, %v832_v38  ;;  %2120 = vrcp.f32 %v2757_v56  ;;  %v810_v59 = vmul.f32 %v2759_v22, %v2745_v16  ;;  %v2769_v38 = vpop.permute.xlu1 %177  ;;  %vm846_vm11 = vmor %vm844_vm10, %vm845_vm9  ;;  %v479_v23 = vadd.f32 %v2631_v3, %v2706_v32 }
 0x226   :  { %v760_v54 = vadd.f32 %v759_v39, %v2700_v17  ;;  %v2765_v9 = vmul.f32 %v837_v48, %v482_v57  ;;  %v841_v5 = vsub.f32 1.0, %v840_v24  ;;  %v851_v57 = vor.u32 1.1754944e-38, %v850_v27  ;;  %v2783_v27 = vpop.permute.xlu0 %172 }
 0x227   :  { %v811_v39 = vsub.f32 1.0, %v810_v59  ;;  %v483_v48 = vadd.f32 %v2639_v13, %v2725_v46  ;;  %vm815_vm13 = vweird.f32 %v2759_v22  ;;  %vm879_vm3 = vweird.f32 %v2757_v56 }
 0x228   :  { %v856_v29 = vadd.f32 %v760_v54, %v478_v35  ;;  %v842_v33 = vmul.f32 %v2115_v42, %v841_v5  ;;  %vm816_vm15 = vmor %vm814_vm14, %vm815_vm13 }
 0x22a   :  { %v2119_v62 = vpop.eup %2118  ;;  %v1984_v43 = vmul.f32 -1.442695, %v856_v29  ;;  %v843_v61 = vadd.f32 %v2115_v42, %v842_v33  ;;  %v812_v33 = vmul.f32 %v2759_v22, %v811_v39 }
 0x22b   :  { %v2771_v60 = vadd.f32 1.0, %v2119_v62  ;;  %v2773_v24 = vpop.eup %2120 }
 0x22c   :  { %2122 = vpow2.f32 %v1984_v43  ;;  %v847_v35 = vsel %vm846_vm11, %v2115_v42, %v843_v61  ;;  %v875_v13 = vmul.f32 %v2773_v24, %v2757_v56  ;;  %v813_v3 = vadd.f32 %v2759_v22, %v812_v33 }
 0x22d   :  { %v761_v54 = vpop.f32.mrf.mxu1  ;;  %v852_v5 = vsel %vm849_vm12, %v851_v57, %v847_v35  ;;  %2124 = vrcp.f32 %v2771_v60  ;;  %v2795_v35 = vpop.permute.xlu1 %162  ;;  %vm880_vm2 = vweird.f32 %v2773_v24  ;;  %vm894_vm7 = vweird.f32 %v2771_v60 }
 0x22e   :  { %v762_v29 = vadd.f32 %v761_v54, %v2723_v30  ;;  %v2781_v59 = vmul.f32 %v852_v5, %v483_v48  ;;  %v876_v61 = vsub.f32 1.0, %v875_v13  ;;  %v820_v48 = vand.u32 2147483648, %v2745_v16  ;;  %3398 = vst [vmem:[#allocation12_spill] sm:$0xff] %v2795_v35  ;;  %vm881_vm4 = vmor %vm879_vm3, %vm880_vm2 }
 0x22f   :  { %v818_v54 = vand.u32 2147483647, %v2745_v16 }
 0x230   :  { %v857_v42 = vadd.f32 %v762_v29, %v479_v23  ;;  %v817_v23 = vsel %vm816_vm15, %v2759_v22, %v813_v3  ;;  %v877_v29 = vmul.f32 %v2773_v24, %v876_v61 }
 0x231   :  { %vm819_vm1 = vcmp.eq.f32.partialorder %v818_v54, 8.507059e+37 }
 0x232   :  { %v2123_v43 = vpop.eup %2122  ;;  %v1985_v41 = vmul.f32 -1.442695, %v857_v42  ;;  %v821_v42 = vor.u32 1.1754944e-38, %v820_v48  ;;  %v2817_v48 = vpop.permute.xlu2 %167 }
 0x233   :  { %v2788_v62 = vadd.f32 1.0, %v2123_v43  ;;  %v2792_v57 = vpop.eup %2124  ;;  %v2806_v43 = vpop.permute.xlu0 %239  ;;  %3400 = vst [vmem:[#allocation14_spill] sm:$0xff] %v2817_v48 }
 0x234   :  { %2126 = vpow2.f32 %v1985_v41  ;;  %v890_v33 = vmul.f32 %v2792_v57, %v2771_v60  ;;  %3399 = vst [vmem:[#allocation13_spill] sm:$0xff] %v2806_v43  ;;  %v822_v16 = vsel %vm819_vm1, %v821_v42, %v817_v23  ;;  %v481_v61 = vadd.f32 %v2635_v7, %v2806_v43 }
 0x235   :  { %v764_v39 = vpop.f32.mrf.mxu1  ;;  %2128 = vrcp.f32 %v2788_v62  ;;  %vm895_vm6 = vweird.f32 %v2792_v57  ;;  %vm909_vm11 = vweird.f32 %v2788_v62 }
 0x236   :  { %v765_v5 = vadd.f32 %v764_v39, %v2795_v35  ;;  %v878_v39 = vadd.f32 %v2773_v24, %v877_v29  ;;  %v891_v22 = vsub.f32 1.0, %v890_v33  ;;  %v935_v29 = vmul.f32 %v822_v16, %v481_v61  ;;  %vm896_vm8 = vmor %vm894_vm7, %vm895_vm6 }
 0x238   :  { %v938_v13 = vadd.f32 %v2743_v20, %v765_v5  ;;  %v885_v20 = vand.u32 2147483648, %v2757_v56  ;;  %v883_v5 = vand.u32 2147483647, %v2757_v56  ;;  %v882_v7 = vsel %vm881_vm4, %v2773_v24, %v878_v39 }
 0x239   :  { %v898_v39 = vand.u32 2147483647, %v2771_v60 }
 0x23a   :  { %v2127_v41 = vpop.eup %2126  ;;  %2130 = vtanh.f32 %v938_v13  ;;  %v892_v13 = vmul.f32 %v2792_v57, %v891_v22  ;;  %v886_v43 = vor.u32 1.1754944e-38, %v885_v20  ;;  %vm884_vm5 = vcmp.eq.f32.partialorder %v883_v5, 8.507059e+37 }
 0x23b   :  { %v2808_v30 = vadd.f32 1.0, %v2127_v41  ;;  %v2812_v3 = vpop.eup %2128  ;;  %vm899_vm9 = vcmp.eq.f32.partialorder %v898_v39, 8.507059e+37 }
 0x23c   :  { %v905_v33 = vmul.f32 %v2812_v3, %v2788_v62  ;;  %v887_v56 = vsel %vm884_vm5, %v886_v43, %v882_v7  ;;  %vm910_vm10 = vweird.f32 %v2812_v3 }
 0x23d   :  { %v766_v54 = vpop.f32.mrf.mxu1  ;;  %2132 = vrcp.f32 %v2808_v30  ;;  %vm911_vm12 = vmor %vm909_vm11, %vm910_vm10  ;;  %vm924_vm15 = vweird.f32 %v2808_v30 }
 0x23e   :  { %v767_v23 = vadd.f32 %v766_v54, %v2817_v48  ;;  %v906_v32 = vsub.f32 1.0, %v905_v33  ;;  %v893_v54 = vadd.f32 %v2792_v57, %v892_v13  ;;  %v900_v48 = vand.u32 2147483648, %v2771_v60 }
 0x240   :  { %v2131_v42 = vpop.eup %2130  ;;  %v939_v41 = vadd.f32 %v935_v29, %v767_v23  ;;  %v907_v43 = vmul.f32 %v2812_v3, %v906_v32  ;;  %v897_v5 = vsel %vm896_vm8, %v2792_v57, %v893_v54  ;;  %v901_v29 = vor.u32 1.1754944e-38, %v900_v48 }
 0x241   :  { %v946_v35 = vsub.f32 %v2295_v2, %v2131_v42  ;;  %v915_v32 = vand.u32 2147483648, %v2788_v62  ;;  %v913_v57 = vand.u32 2147483647, %v2788_v62 }
 0x242   :  { %2134 = vtanh.f32 %v939_v41  ;;  %v902_v60 = vsel %vm899_vm9, %v901_v29, %v897_v5  ;;  %v908_v7 = vadd.f32 %v2812_v3, %v907_v43  ;;  %v928_v5 = vand.u32 2147483647, %v2808_v30 }
 0x243   :  { %v950_v16 = vmul.f32 %v946_v35, %v887_v56  ;;  %v2133_v61 = vpop.eup %2132  ;;  %vm914_vm13 = vcmp.eq.f32.partialorder %v913_v57, 8.507059e+37 }
 0x244   :  { %v920_v20 = vmul.f32 %v2133_v61, %v2808_v30  ;;  %vm925_vm14 = vweird.f32 %v2133_v61  ;;  %vm929_vm2 = vcmp.eq.f32.partialorder %v928_v5, 8.507059e+37 }
 0x245   :  { %v769_v24 = vpop.f32.mrf.mxu1  ;;  %v2833_v22 = vadd.f32 %v2131_v42, %v950_v16  ;;  %vm926_vm1 = vmor %vm924_vm15, %vm925_vm14 }
 0x246   :  { %v770_v2 = vadd.f32 %v769_v24, %v2783_v27  ;;  %v921_v13 = vsub.f32 1.0, %v920_v20  ;;  %v916_v24 = vor.u32 1.1754944e-38, %v915_v32  ;;  %v930_v20 = vand.u32 2147483648, %v2808_v30 }
 0x248   :  { %v2135_v35 = vpop.eup %2134  ;;  %v940_v23 = vadd.f32 %v2765_v9, %v770_v2  ;;  %v922_v56 = vmul.f32 %v2133_v61, %v921_v13  ;;  %v2898_v13 = vld [vmem:[%s3354_s2 + $0x20] sm:$0xff] }
 0x249   :  { %v947_v33 = vsub.f32 %v2302_v4, %v2135_v35  ;;  %v912_v4 = vsel %vm911_vm12, %v2812_v3, %v908_v7  ;;  %3402 = vst [vmem:[#allocation16_spill] sm:$0xff] %v2898_v13 }
 0x24a   :  { %2136 = vtanh.f32 %v940_v23  ;;  %v917_v2 = vsel %vm914_vm13, %v916_v24, %v912_v4  ;;  %v923_v43 = vadd.f32 %v2133_v61, %v922_v56  ;;  %v931_v23 = vor.u32 1.1754944e-38, %v930_v20 }
 0x24b   :  { %v951_v42 = vmul.f32 %v947_v33, %v902_v60 }
 0x24d   :  { %v771_v41 = vpop.f32.mrf.mxu1  ;;  %v2846_v9 = vadd.f32 %v2135_v35, %v951_v42  ;;  %v927_v35 = vsel %vm926_vm1, %v2133_v61, %v923_v43  ;;  %v2891_v61 = vld [vmem:[%s3354_s2 + $0x18] sm:$0xff] }
 0x24e   :  { %v772_v48 = vadd.f32 %v771_v41, %v2769_v38  ;;  %v932_v29 = vsel %vm929_vm2, %v931_v23, %v927_v35  ;;  %3401 = vst [vmem:[#allocation15_spill] sm:$0xff] %v2891_v61 }
 0x24f   :  { %v958_v30 = vpack.c.bf16 %v2846_v9, %v2833_v22 }
 0x250   :  { %v2137_v54 = vpop.eup %2136  ;;  %v941_v16 = vadd.f32 %v2781_v59, %v772_v48 }
 0x251   :  { %v948_v39 = vsub.f32 %v2285_v0, %v2137_v54 }
 0x252   :  { %2138 = vtanh.f32 %v941_v16 }
 0x253   :  { %v952_v62 = vmul.f32 %v948_v39, %v917_v2 }
 0x255   :  { %v2855_v3 = vadd.f32 %v2137_v54, %v952_v62 }
 0x258   :  { %v2139_v59 = vpop.eup %2138 }
 0x259   :  { %v949_v0 = vsub.f32 %v2290_v1, %v2139_v59  ;;  %v2874_v1 = vld [vmem:[%s3354_s2 + $0x8] sm:$0xff] }
 0x25b   :  { %v953_v33 = vmul.f32 %v949_v0, %v932_v29 }
 0x25d   :  { %v2858_v60 = vadd.f32 %v2139_v59, %v953_v33 }
 0x25f   :  { %v959_v7 = vpack.c.bf16 %v2858_v60, %v2855_v3 }
 0x261   :  { %966 = vmatpush.bf16.msra.mxu2 %v959_v7 }
 0x265   :  { %967 = vmatpush.bf16.msra.mxu2 %v958_v30 }
 0x268   :  { %1986 = vmatmul.msk.bf16.vlgmr.msra.gmra.mxu2 %vm318_vm0, %v2309_v6  ;;  %v2884_v6 = vld [vmem:[%s3354_s2 + $0x10] sm:$0xff] }
 0x269   :  { %1127 = vmatpush.bf16.msrb.mxu2 %v2490_v51 }
 0x26d   :  { %1128 = vmatpush.bf16.msrb.mxu2 %v2508_v55 }
 0x271   :  { %1129 = vmatpush.bf16.msrb.mxu2 %v2526_v58 }
 0x275   :  { %1130 = vmatpush.bf16.msrb.mxu2 %v2539_v63 }
 0x278   :  { %1987 = vmatmul.msk.bf16.gmra.mxu2 %vm318_vm0, %v2874_v1 }
 0x279   :  { %1131 = vmatpush.bf16.msrb.mxu2 %v2555_v10 }
 0x27d   :  { %1132 = vmatpush.bf16.msrb.mxu2 %v2569_v14 }
 0x281   :  { %1133 = vmatpush.bf16.msrb.mxu2 %v2584_v15 }
 0x285   :  { %1134 = vmatpush.bf16.msrb.mxu2 %v2591_v21 }
 0x288   :  { %1988 = vmatmul.msk.bf16.gmra.mxu2 %vm318_vm0, %v2884_v6 }
 0x298   :  { %1989 = vmatmul.msk.bf16.gmra.mxu2 %vm318_vm0, %v2891_v61  ;;  %v2947_v61 = vld [vmem:[%s3357_s1 + $0xb8] sm:$0xff] }
 0x2a8   :  { %1990 = vmatmul.msk.bf16.gmra.mxu2 %vm318_vm0, %v2898_v13 }
 0x2b8   :  { %1991 = vmatmul.msk.bf16.gmra.mxu2 %vm318_vm0, %v2357_v18 }
 0x2c8   :  { %1992 = vmatmul.msk.bf16.gmra.mxu2 %vm318_vm0, %v2402_v26 }
 0x2d8   :  { %1993 = vmatmul.msk.bf16.gmra.mxu2 %vm318_vm0, %v2436_v31 }
 0x2e8   :  { %1994 = vmatmul.msk.bf16.gmra.mxu2 %vm318_vm0, %v2463_v37 }
 0x2eb   :  { %v969_v42 = vpop.f32.mrf.mxu2 }
 0x2ec   :  { %v1029_v32 = vpack.c.bf16 %v969_v42, %v969_v42 }
 0x2ee   :  { %v1045_v48 = vunpack.c.l.b16 %v1029_v32 }
 0x2f3   :  { %v971_v41 = vpop.f32.mrf.mxu2 }
 0x2f4   :  { %v1030_v57 = vpack.c.bf16 %v971_v41, %v971_v41 }
 0x2f6   :  { %v1046_v4 = vunpack.c.l.b16 %v1030_v57 }
 0x2f8   :  { %1995 = vmatmul.msk.bf16.gmra.mxu2 %vm318_vm0, %v2495_v52  ;;  %v1049_v56 = vpack.c.b16 %v1046_v4, %v1045_v48 }
 0x2fa   :  { %1097 = vmatmul.bf16.vlgmr.msra.gmra.mxu3 %v1049_v56 }
 0x2fb   :  { %v974_v18 = vpop.f32.mrf.mxu2  ;;  %2080 = vmatpush.bf16.msra.mxu3 %v2490_v51 }
 0x2fc   :  { %v1031_v26 = vpack.c.bf16 %v974_v18, %v974_v18 }
 0x2fe   :  { %v1047_v54 = vunpack.c.l.b16 %v1031_v26 }
 0x2ff   :  { %2081 = vmatpush.bf16.msra.mxu3 %v2508_v55 }
 0x303   :  { %v976_v31 = vpop.f32.mrf.mxu2  ;;  %2082 = vmatpush.bf16.msra.mxu3 %v2526_v58 }
 0x304   :  { %v1032_v37 = vpack.c.bf16 %v976_v31, %v976_v31 }
 0x306   :  { %v1048_v16 = vunpack.c.l.b16 %v1032_v37 }
 0x307   :  { %2083 = vmatpush.bf16.msra.mxu3 %v2539_v63 }
 0x308   :  { %1996 = vmatmul.msk.bf16.gmra.mxu2 %vm318_vm0, %v2560_v12  ;;  %v1050_v52 = vpack.c.b16 %v1048_v16, %v1047_v54 }
 0x30a   :  { %1102 = vmatmul.bf16.gmra.mxu3 %v1050_v52 }
 0x30b   :  { %v979_v24 = vpop.f32.mrf.mxu2  ;;  %2084 = vmatpush.bf16.msra.mxu3 %v2555_v10 }
 0x30c   :  { %v1033_v51 = vpack.c.bf16 %v979_v24, %v979_v24 }
 0x30e   :  { %v1057_v2 = vunpack.c.l.b16 %v1033_v51 }
 0x30f   :  { %2085 = vmatpush.bf16.msra.mxu3 %v2569_v14 }
 0x313   :  { %v981_v55 = vpop.f32.mrf.mxu2  ;;  %2086 = vmatpush.bf16.msra.mxu3 %v2584_v15 }
 0x314   :  { %v1034_v39 = vpack.c.bf16 %v981_v55, %v981_v55 }
 0x316   :  { %v1058_v43 = vunpack.c.l.b16 %v1034_v39 }
 0x317   :  { %2087 = vmatpush.bf16.msra.mxu3 %v2591_v21 }
 0x318   :  { %1997 = vmatmul.msk.bf16.gmra.mxu2 %vm318_vm0, %v2598_v19  ;;  %v1061_v12 = vpack.c.b16 %v1058_v43, %v1057_v2 }
 0x31a   :  { %1116 = vmatmul.bf16.vlgmr.msrb.gmra.mxu3 %v1061_v12 }
 0x31b   :  { %v984_v62 = vpop.f32.mrf.mxu2 }
 0x31c   :  { %v1035_v20 = vpack.c.bf16 %v984_v62, %v984_v62 }
 0x31e   :  { %v1059_v59 = vunpack.c.l.b16 %v1035_v20 }
 0x323   :  { %v986_v5 = vpop.f32.mrf.mxu2 }
 0x324   :  { %v1036_v35 = vpack.c.bf16 %v986_v5, %v986_v5 }
 0x326   :  { %v1060_v23 = vunpack.c.l.b16 %v1036_v35 }
 0x328   :  { %v1062_v0 = vpack.c.b16 %v1060_v23, %v1059_v59 }
 0x32a   :  { %1121 = vmatmul.bf16.gmra.mxu3 %v1062_v0 }
 0x32b   :  { %v989_v29 = vpop.f32.mrf.mxu2 }
 0x32c   :  { %v1037_v33 = vpack.c.bf16 %v989_v29, %v989_v29 }
 0x32e   :  { %v1069_v42 = vunpack.c.l.b16 %v1037_v33 }
 0x333   :  { %v991_v7 = vpop.f32.mrf.mxu2 }
 0x334   :  { %v1038_v30 = vpack.c.bf16 %v991_v7, %v991_v7 }
 0x336   :  { %v1070_v32 = vunpack.c.l.b16 %v1038_v30 }
 0x338   :  { %v1073_v41 = vpack.c.b16 %v1070_v32, %v1069_v42 }
 0x33a   :  { %1135 = vmatmul.bf16.vlgmr.msrb.gmra.mxu2 %v1073_v41 }
 0x33b   :  { %v994_v57 = vpop.f32.mrf.mxu2 }
 0x33c   :  { %v1039_v19 = vpack.c.bf16 %v994_v57, %v994_v57 }
 0x33e   :  { %v1071_v56 = vunpack.c.l.b16 %v1039_v19 }
 0x343   :  { %v996_v48 = vpop.f32.mrf.mxu2 }
 0x344   :  { %v1040_v4 = vpack.c.bf16 %v996_v48, %v996_v48 }
 0x346   :  { %v1072_v18 = vunpack.c.l.b16 %v1040_v4 }
 0x348   :  { %v1074_v26 = vpack.c.b16 %v1072_v18, %v1071_v56 }
 0x34a   :  { %1140 = vmatmul.bf16.vlgmr.msra.gmra.mxu3 %v1074_v26 }
 0x34b   :  { %v999_v31 = vpop.f32.mrf.mxu2 }
 0x353   :  { %v2924_v37 = vpop.f32.mrf.mxu2 }
 0x35b   :  { %v1004_v54 = vpop.f32.mrf.mxu2 }
 0x363   :  { %v2926_v16 = vpop.f32.mrf.mxu2 }
 0x36b   :  { %v2928_v52 = vpop.f32.mrf.mxu2 }
 0x373   :  { %v2930_v51 = vpop.f32.mrf.mxu2 }
 0x37b   :  { %v2932_v39 = vpop.f32.mrf.mxu2 }
 0x37d   :  { %v1098_v24 = vpop.f32.mrf.mxu3 }
 0x383   :  { %v2934_v43 = vpop.f32.mrf.mxu2 }
 0x385   :  { %v1100_v55 = vpop.f32.mrf.mxu3 }
 0x38b   :  { %v2936_v62 = vpop.f32.mrf.mxu2 }
 0x38d   :  { %v1103_v2 = vpop.f32.mrf.mxu3 }
 0x393   :  { %v2938_v5 = vpop.f32.mrf.mxu2 }
 0x395   :  { %v1105_v12 = vpop.f32.mrf.mxu3 }
 0x39b   :  { %v2940_v59 = vpop.f32.mrf.mxu2 }
 0x39d   :  { %v1117_v20 = vpop.f32.mrf.mxu3 }
 0x39e   :  { %v1118_v4 = vadd.f32 %v1117_v20, %v1098_v24  ;;  %v2955_v24 = vld [vmem:[%s3357_s1 + $0xb0] sm:$0xff] }
 0x3a3   :  { %v2942_v0 = vpop.f32.mrf.mxu2 }
 0x3a5   :  { %v1119_v35 = vpop.f32.mrf.mxu3 }
 0x3a6   :  { %v1120_v57 = vadd.f32 %v1119_v35, %v1100_v55  ;;  %v3404_v55 = vld [vmem:[#allocation2_spill] sm:$0xff] }
 0x3ad   :  { %v1122_v23 = vpop.f32.mrf.mxu3 }
 0x3ae   :  { %v1123_v30 = vadd.f32 %v1122_v23, %v1103_v2 }
 0x3b5   :  { %v1124_v29 = vpop.f32.mrf.mxu3 }
 0x3b6   :  { %v1125_v42 = vadd.f32 %v1124_v29, %v1105_v12 }
 0x3bd   :  { %v1136_v33 = vpop.f32.mrf.mxu2 }
 0x3be   :  { %v1137_v26 = vadd.f32 %v1136_v33, %v1118_v4 }
 0x3c5   :  { %v1138_v32 = vpop.f32.mrf.mxu2 }
 0x3c6   :  { %v1139_v56 = vadd.f32 %v1138_v32, %v1120_v57 }
 0x3c8   :  { %v1146_v13 = vpack.c.bf16 %v1139_v56, %v1137_v26 }
 0x3cd   :  { %v1141_v7 = vpop.f32.mrf.mxu3 }
 0x3ce   :  { %v1142_v19 = vadd.f32 %v1141_v7, %v1123_v30  ;;  %v1080_v30 = vadd.f32 %v2926_v16, %v2711_v36 }
 0x3d5   :  { %v1143_v41 = vpop.f32.mrf.mxu3 }
 0x3d6   :  { %v1144_v48 = vadd.f32 %v1143_v41, %v1125_v42  ;;  %v3406_v42 = vld [vmem:[#allocation3_spill] sm:$0xff] }
 0x3d8   :  { %v1147_v18 = vpack.c.bf16 %v1144_v48, %v1142_v19 }
 0x3da   :  { %1154 = vmatpush.bf16.msrb.mxu1 %v1147_v18 }
 0x3de   :  { %1155 = vmatpush.bf16.msrb.mxu1 %v1146_v13  ;;  %v3403_v13 = vld [vmem:[#allocation4_spill] sm:$0xff] }
 0x3e1   :  { %1998 = vmatmul.msk.bf16.vlgmr.msrb.gmra.mxu1 %vm318_vm0, %v2644_v45 }
 0x3e2   :  { %2088 = vmatpush.bf16.msra.mxu1 %v2947_v61 }
 0x3e6   :  { %2089 = vmatpush.bf16.msra.mxu1 %v2955_v24 }
 0x3ea   :  { %2090 = vmatpush.bf16.msra.mxu1 %v2526_v58 }
 0x3ee   :  { %2091 = vmatpush.bf16.msra.mxu1 %v2539_v63  ;;  %v1077_v63 = vadd.f32 %v999_v31, %v2704_v28 }
 0x3f1   :  { %1999 = vmatmul.msk.bf16.gmra.mxu1 %vm318_vm0, %v2657_v47 }
 0x3f2   :  { %2092 = vmatpush.bf16.msra.mxu1 %v2555_v10 }
 0x3f6   :  { %2093 = vmatpush.bf16.msra.mxu1 %v2569_v14 }
 0x3fa   :  { %2094 = vmatpush.bf16.msra.mxu1 %v2584_v15 }
 0x3fe   :  { %2095 = vmatpush.bf16.msra.mxu1 %v2591_v21 }
 0x401   :  { %2000 = vmatmul.msk.bf16.gmra.mxu1 %vm318_vm0, %v2664_v11 }
 0x411   :  { %2001 = vmatmul.msk.bf16.gmra.mxu1 %vm318_vm0, %v2674_v49 }
 0x421   :  { %2002 = vmatmul.msk.bf16.gmra.mxu1 %vm318_vm0, %v2681_v50  ;;  %v1079_v50 = vadd.f32 %v1004_v54, %v3403_v13 }
 0x431   :  { %2003 = vmatmul.msk.bf16.gmra.mxu1 %vm318_vm0, %v2688_v53  ;;  %v3405_v53 = vld [vmem:[#allocation6_spill] sm:$0xff] }
 0x432   :  { %v1078_v12 = vadd.f32 %v2924_v37, %v3405_v53 }
 0x45e   :  { %v1157_v58 = vpop.f32.mrf.mxu1 }
 0x45f   :  { %v1158_v10 = vadd.f32 %v1157_v58, %v2692_v34  ;;  %v1085_v58 = vadd.f32 %v2936_v62, %v2734_v44 }
 0x461   :  { %v1187_v14 = vadd.f32 %v1158_v10, %v1077_v63 }
 0x463   :  { %v2004_v15 = vmul.f32 -1.442695, %v1187_v14  ;;  %v1081_v14 = vadd.f32 %v2928_v52, %v2713_v25  ;;  %v3409_v52 = vld [vmem:[#allocation9_spill] sm:$0xff] }
 0x465   :  { %2140 = vpow2.f32 %v2004_v15  ;;  %v3407_v15 = vld [vmem:[#allocation8_spill] sm:$0xff] }
 0x466   :  { %v1159_v21 = vpop.f32.mrf.mxu1 }
 0x467   :  { %v1160_v11 = vadd.f32 %v1159_v21, %v2696_v8 }
 0x469   :  { %v1188_v20 = vadd.f32 %v1160_v11, %v1078_v12 }
 0x46b   :  { %v2141_v45 = vpop.eup %2140  ;;  %v2005_v33 = vmul.f32 -1.442695, %v1188_v20 }
 0x46c   :  { %v1203_v47 = vadd.f32 1.0, %v2141_v45 }
 0x46e   :  { %2142 = vrcp.f32 %v1203_v47  ;;  %v1162_v49 = vpop.f32.mrf.mxu1  ;;  %v1218_v54 = vand.u32 2147483648, %v1203_v47  ;;  %v1216_v48 = vand.u32 2147483647, %v1203_v47  ;;  %vm1212_vm4 = vweird.f32 %v1203_v47 }
 0x46f   :  { %v1163_v2 = vadd.f32 %v1162_v49, %v3404_v55 }
 0x470   :  { %v1219_v26 = vor.u32 1.1754944e-38, %v1218_v54  ;;  %vm1217_vm6 = vcmp.eq.f32.partialorder %v1216_v48, 8.507059e+37 }
 0x471   :  { %v1189_v31 = vadd.f32 %v1163_v2, %v1079_v50 }
 0x473   :  { %v2006_v35 = vmul.f32 -1.442695, %v1189_v31 }
 0x474   :  { %v2143_v23 = vpop.eup %2142 }
 0x475   :  { %2144 = vpow2.f32 %v2006_v35  ;;  %v1208_v29 = vmul.f32 %v2143_v23, %v1203_v47  ;;  %vm1213_vm3 = vweird.f32 %v2143_v23  ;;  %v3408_v35 = vld [vmem:[#allocation10_spill] sm:$0xff] }
 0x476   :  { %v1164_v7 = vpop.f32.mrf.mxu1  ;;  %2146 = vpow2.f32 %v2005_v33  ;;  %vm1214_vm5 = vmor %vm1212_vm4, %vm1213_vm3 }
 0x477   :  { %v1165_v32 = vadd.f32 %v1164_v7, %v3406_v42  ;;  %v1209_v41 = vsub.f32 1.0, %v1208_v29 }
 0x479   :  { %v1190_v57 = vadd.f32 %v1165_v32, %v1080_v30  ;;  %v1210_v19 = vmul.f32 %v2143_v23, %v1209_v41 }
 0x47b   :  { %v2145_v37 = vpop.eup %2144  ;;  %v2007_v4 = vmul.f32 -1.442695, %v1190_v57  ;;  %v1211_v56 = vadd.f32 %v2143_v23, %v1210_v19 }
 0x47c   :  { %v1205_v18 = vadd.f32 1.0, %v2145_v37  ;;  %v2147_v47 = vpop.eup %2146  ;;  %v3410_v37 = vld [vmem:[#allocation11_spill] sm:$0xff] }
 0x47d   :  { %2148 = vpow2.f32 %v2007_v4  ;;  %v1215_v16 = vsel %vm1214_vm5, %v2143_v23, %v1211_v56  ;;  %v2991_v50 = vadd.f32 1.0, %v2147_v47  ;;  %v1082_v23 = vadd.f32 %v2930_v51, %v3408_v35 }
 0x47e   :  { %2150 = vrcp.f32 %v1205_v18  ;;  %v1167_v63 = vpop.f32.mrf.mxu1  ;;  %v1220_v10 = vsel %vm1217_vm6, %v1219_v26, %v1215_v16  ;;  %v1248_v7 = vand.u32 2147483648, %v1205_v18  ;;  %v1246_v41 = vand.u32 2147483647, %v1205_v18 }
 0x47f   :  { %v1168_v21 = vadd.f32 %v1167_v63, %v3407_v15  ;;  %v2989_v45 = vmul.f32 %v1220_v10, %v1085_v58  ;;  %vm1242_vm8 = vweird.f32 %v1205_v18  ;;  %v1087_v4 = vadd.f32 %v2940_v59, %v3410_v37 }
 0x480   :  { %v1249_v51 = vor.u32 1.1754944e-38, %v1248_v7  ;;  %vm1247_vm10 = vcmp.eq.f32.partialorder %v1246_v41, 8.507059e+37  ;;  %v1083_v63 = vadd.f32 %v2932_v39, %v2729_v40  ;;  %vm1227_vm1 = vweird.f32 %v2991_v50 }
 0x481   :  { %v1267_v11 = vadd.f32 %v1168_v21, %v1081_v14 }
 0x483   :  { %v2149_v49 = vpop.eup %2148  ;;  %v2008_v2 = vmul.f32 -1.442695, %v1267_v11 }
 0x484   :  { %v2151_v62 = vpop.eup %2150  ;;  %v1206_v12 = vadd.f32 1.0, %v2149_v49 }
 0x485   :  { %2152 = vpow2.f32 %v2008_v2  ;;  %v1238_v31 = vmul.f32 %v2151_v62, %v1205_v18  ;;  %vm1243_vm7 = vweird.f32 %v2151_v62 }
 0x486   :  { %2154 = vrcp.f32 %v1206_v12  ;;  %v1169_v20 = vpop.f32.mrf.mxu1  ;;  %vm1244_vm9 = vmor %vm1242_vm8, %vm1243_vm7  ;;  %v1263_v11 = vand.u32 2147483648, %v1206_v12  ;;  %vm1257_vm12 = vweird.f32 %v1206_v12 }
 0x487   :  { %2156 = vrcp.f32 %v2991_v50  ;;  %v1170_v29 = vadd.f32 %v1169_v20, %v3409_v52  ;;  %v1239_v33 = vsub.f32 1.0, %v1238_v31 }
 0x489   :  { %v1268_v30 = vadd.f32 %v1170_v29, %v1082_v23  ;;  %v1240_v32 = vmul.f32 %v2151_v62, %v1239_v33  ;;  %v1264_v33 = vor.u32 1.1754944e-38, %v1263_v11  ;;  %v1231_v11 = vand.u32 2147483647, %v2991_v50 }
 0x48b   :  { %v2153_v54 = vpop.eup %2152  ;;  %v2009_v57 = vmul.f32 -1.442695, %v1268_v30  ;;  %v1241_v19 = vadd.f32 %v2151_v62, %v1240_v32  ;;  %v1088_v30 = vadd.f32 %v2942_v0, %v2725_v46  ;;  %vm1232_vm3 = vcmp.eq.f32.partialorder %v1231_v11, 8.507059e+37 }
 0x48c   :  { %v2155_v48 = vpop.eup %2154  ;;  %v2999_v56 = vadd.f32 1.0, %v2153_v54 }
 0x48d   :  { %v3001_v26 = vpop.eup %2156  ;;  %2158 = vpow2.f32 %v2009_v57  ;;  %v1245_v58 = vsel %vm1244_vm9, %v2151_v62, %v1241_v19  ;;  %v1253_v16 = vmul.f32 %v2155_v48, %v1206_v12  ;;  %vm1258_vm11 = vweird.f32 %v2155_v48  ;;  %v3411_v57 = vld [vmem:[#allocation5_spill] sm:$0xff] }
 0x48e   :  { %v1172_v10 = vpop.f32.mrf.mxu1  ;;  %v1250_v14 = vsel %vm1247_vm10, %v1249_v51, %v1245_v58  ;;  %2160 = vrcp.f32 %v2999_v56  ;;  %v1223_v47 = vmul.f32 %v3001_v26, %v2991_v50  ;;  %v1261_v62 = vand.u32 2147483647, %v1206_v12  ;;  %vm1259_vm13 = vmor %vm1257_vm12, %vm1258_vm11  ;;  %v3412_v12 = vld [vmem:[#allocation7_spill] sm:$0xff] }
 0x48f   :  { %v1173_v18 = vadd.f32 %v1172_v10, %v2700_v17  ;;  %v3007_v59 = vmul.f32 %v1250_v14, %v1087_v4  ;;  %v1254_v21 = vsub.f32 1.0, %v1253_v16  ;;  %v1084_v19 = vadd.f32 %v2934_v43, %v3411_v57 }
 0x490   :  { %v1224_v29 = vsub.f32 1.0, %v1223_v47  ;;  %vm1262_vm14 = vcmp.eq.f32.partialorder %v1261_v62, 8.507059e+37  ;;  %vm1228_vm15 = vweird.f32 %v3001_v26  ;;  %vm1292_vm5 = vweird.f32 %v2999_v56 }
 0x491   :  { %v1269_v49 = vadd.f32 %v1173_v18, %v1083_v63  ;;  %v1255_v2 = vmul.f32 %v2155_v48, %v1254_v21  ;;  %v1233_v21 = vand.u32 2147483648, %v2991_v50  ;;  %vm1229_vm2 = vmor %vm1227_vm1, %vm1228_vm15 }
 0x492   :  { %v1225_v16 = vmul.f32 %v3001_v26, %v1224_v29 }
 0x493   :  { %v2159_v31 = vpop.eup %2158  ;;  %v2010_v20 = vmul.f32 -1.442695, %v1269_v49  ;;  %v1256_v39 = vadd.f32 %v2155_v48, %v1255_v2  ;;  %v3413_v49 = vld [vmem:[#allocation12_spill] sm:$0xff]  ;;  %v1234_v29 = vor.u32 1.1754944e-38, %v1233_v21 }
 0x494   :  { %v3011_v23 = vadd.f32 1.0, %v2159_v31  ;;  %v3013_v7 = vpop.eup %2160  ;;  %v1226_v18 = vadd.f32 %v3001_v26, %v1225_v16  ;;  %v3415_v16 = vld [vmem:[#allocation14_spill] sm:$0xff] }
 0x495   :  { %2162 = vpow2.f32 %v2010_v20  ;;  %v1260_v32 = vsel %vm1259_vm13, %v2155_v48, %v1256_v39  ;;  %v1288_v58 = vmul.f32 %v3013_v7, %v2999_v56  ;;  %vm1293_vm4 = vweird.f32 %v3013_v7 }
 0x496   :  { %v1174_v41 = vpop.f32.mrf.mxu1  ;;  %v1265_v54 = vsel %vm1262_vm14, %v1264_v33, %v1260_v32  ;;  %2164 = vrcp.f32 %v3011_v23  ;;  %v1230_v31 = vsel %vm1229_vm2, %v3001_v26, %v1226_v18  ;;  %vm1294_vm6 = vmor %vm1292_vm5, %vm1293_vm4  ;;  %vm1307_vm9 = vweird.f32 %v3011_v23 }
 0x497   :  { %v1175_v4 = vadd.f32 %v1174_v41, %v3412_v12  ;;  %v3021_v51 = vmul.f32 %v1265_v54, %v1088_v30  ;;  %v1289_v10 = vsub.f32 1.0, %v1288_v58  ;;  %v1235_v30 = vsel %vm1232_vm3, %v1234_v29, %v1230_v31 }
 0x498   :  { %v1296_v58 = vand.u32 2147483647, %v2999_v56  ;;  %v1311_v29 = vand.u32 2147483647, %v3011_v23 }
 0x499   :  { %v1270_v0 = vadd.f32 %v1175_v4, %v1084_v19  ;;  %v1290_v20 = vmul.f32 %v3013_v7, %v1289_v10  ;;  %v3414_v19 = vld [vmem:[#allocation13_spill] sm:$0xff]  ;;  %v1298_v4 = vand.u32 2147483648, %v2999_v56 }
 0x49a   :  { %v1086_v26 = vadd.f32 %v2938_v5, %v3414_v19  ;;  %vm1297_vm7 = vcmp.eq.f32.partialorder %v1296_v58, 8.507059e+37  ;;  %vm1312_vm11 = vcmp.eq.f32.partialorder %v1311_v29, 8.507059e+37 }
 0x49b   :  { %v2163_v63 = vpop.eup %2162  ;;  %v2011_v48 = vmul.f32 -1.442695, %v1270_v0  ;;  %v1291_v41 = vadd.f32 %v3013_v7, %v1290_v20 }
 0x49c   :  { %v3026_v14 = vadd.f32 1.0, %v2163_v63  ;;  %v3030_v43 = vpop.eup %2164  ;;  %v1348_v63 = vmul.f32 %v1235_v30, %v1086_v26 }
 0x49d   :  { %2166 = vpow2.f32 %v2011_v48  ;;  %v1303_v62 = vmul.f32 %v3030_v43, %v3011_v23  ;;  %v1295_v10 = vsel %vm1294_vm6, %v3013_v7, %v1291_v41  ;;  %vm1308_vm8 = vweird.f32 %v3030_v43 }
 0x49e   :  { %v1177_v47 = vpop.f32.mrf.mxu1  ;;  %2168 = vrcp.f32 %v3026_v14  ;;  %vm1309_vm10 = vmor %vm1307_vm9, %vm1308_vm8  ;;  %vm1322_vm13 = vweird.f32 %v3026_v14 }
 0x49f   :  { %v1178_v2 = vadd.f32 %v1177_v47, %v3413_v49  ;;  %v1304_v50 = vsub.f32 1.0, %v1303_v62  ;;  %v1299_v47 = vor.u32 1.1754944e-38, %v1298_v4 }
 0x4a1   :  { %v1351_v39 = vadd.f32 %v2989_v45, %v1178_v2  ;;  %v1305_v5 = vmul.f32 %v3030_v43, %v1304_v50  ;;  %v1300_v56 = vsel %vm1297_vm7, %v1299_v47, %v1295_v10  ;;  %v1328_v10 = vand.u32 2147483648, %v3026_v14 }
 0x4a3   :  { %v2167_v33 = vpop.eup %2166  ;;  %2170 = vtanh.f32 %v1351_v39  ;;  %v1306_v62 = vadd.f32 %v3030_v43, %v1305_v5  ;;  %v1313_v39 = vand.u32 2147483648, %v3011_v23  ;;  %v1326_v5 = vand.u32 2147483647, %v3026_v14 }
 0x4a4   :  { %v3042_v32 = vadd.f32 1.0, %v2167_v33  ;;  %v3046_v54 = vpop.eup %2168 }
 0x4a5   :  { %v1318_v48 = vmul.f32 %v3046_v54, %v3026_v14  ;;  %v1310_v41 = vsel %vm1309_vm10, %v3030_v43, %v1306_v62  ;;  %vm1323_vm12 = vweird.f32 %v3046_v54  ;;  %vm1327_vm15 = vcmp.eq.f32.partialorder %v1326_v5, 8.507059e+37 }
 0x4a6   :  { %v1179_v45 = vpop.f32.mrf.mxu1  ;;  %2172 = vrcp.f32 %v3042_v32  ;;  %vm1324_vm14 = vmor %vm1322_vm13, %vm1323_vm12  ;;  %vm1337_vm2 = vweird.f32 %v3042_v32 }
 0x4a7   :  { %v1180_v0 = vadd.f32 %v1179_v45, %v3415_v16  ;;  %v1319_v2 = vsub.f32 1.0, %v1318_v48  ;;  %v1314_v45 = vor.u32 1.1754944e-38, %v1313_v39  ;;  %v1343_v39 = vand.u32 2147483648, %v3042_v32 }
 0x4a9   :  { %v2171_v18 = vpop.eup %2170  ;;  %v1352_v21 = vadd.f32 %v1348_v63, %v1180_v0  ;;  %v1320_v30 = vmul.f32 %v3046_v54, %v1319_v2  ;;  %v1315_v23 = vsel %vm1312_vm11, %v1314_v45, %v1310_v41  ;;  %v2227_v45 = vld [vmem:[%s3354_s2 + $0x28] sm:$0xff] }
 0x4aa   :  { %v1359_v11 = vsub.f32 %v2833_v22, %v2171_v18 }
 0x4ab   :  { %2174 = vtanh.f32 %v1352_v21  ;;  %v1321_v63 = vadd.f32 %v3046_v54, %v1320_v30 }
 0x4ac   :  { %v1363_v31 = vmul.f32 %v1359_v11, %v1300_v56  ;;  %v2173_v20 = vpop.eup %2172  ;;  %v1329_v56 = vor.u32 1.1754944e-38, %v1328_v10 }
 0x4ad   :  { %v1333_v50 = vmul.f32 %v2173_v20, %v3042_v32  ;;  %v1325_v21 = vsel %vm1324_vm14, %v3046_v54, %v1321_v63  ;;  %vm1338_vm1 = vweird.f32 %v2173_v20 }
 0x4ae   :  { %v1182_v7 = vpop.f32.mrf.mxu1  ;;  %v3065_v33 = vadd.f32 %v2171_v18, %v1363_v31  ;;  %v1330_v62 = vsel %vm1327_vm15, %v1329_v56, %v1325_v21  ;;  %vm1339_vm3 = vmor %vm1337_vm2, %vm1338_vm1 }
 0x4af   :  { %v1183_v22 = vadd.f32 %v1182_v7, %v2783_v27  ;;  %v1334_v0 = vsub.f32 1.0, %v1333_v50  ;;  %v1341_v7 = vand.u32 2147483647, %v3042_v32 }
 0x4b1   :  { %v2175_v26 = vpop.eup %2174  ;;  %v1353_v4 = vadd.f32 %v3007_v59, %v1183_v22  ;;  %v1344_v22 = vor.u32 1.1754944e-38, %v1343_v39  ;;  %vm1342_vm4 = vcmp.eq.f32.partialorder %v1341_v7, 8.507059e+37  ;;  %v2235_v39 = vld [vmem:[%s3357_s1 + $0x98] sm:$0xff]  ;;  %v2236_v7 = vld [vmem:[%s3357_s1 + $0x90] sm:$0xff] }
 0x4b2   :  { %v1360_v58 = vsub.f32 %v2846_v9, %v2175_v26  ;;  %v1335_v9 = vmul.f32 %v2173_v20, %v1334_v0 }
 0x4b3   :  { %2176 = vtanh.f32 %v1353_v4  ;;  %v3417_v4 = vld [vmem:[#allocation16_spill] sm:$0xff] }
 0x4b4   :  { %v1364_v48 = vmul.f32 %v1360_v58, %v1315_v23  ;;  %v1336_v31 = vadd.f32 %v2173_v20, %v1335_v9  ;;  %v2228_v58 = vld [vmem:[%s3354_s2 + $0x30] sm:$0xff] }
 0x4b6   :  { %v1184_v43 = vpop.f32.mrf.mxu1  ;;  %v3078_v59 = vadd.f32 %v2175_v26, %v1364_v48  ;;  %v1340_v54 = vsel %vm1339_vm3, %v2173_v20, %v1336_v31  ;;  %v2226_v20 = vld [vmem:[%s3354_s2] sm:$0xff] }
 0x4b7   :  { %v1185_v18 = vadd.f32 %v1184_v43, %v2769_v38  ;;  %v1345_v30 = vsel %vm1342_vm4, %v1344_v22, %v1340_v54  ;;  %v2233_v31 = vld [vmem:[%s3357_s1 + $0xa0] sm:$0xff]  ;;  %v2237_v22 = vld [vmem:[%s3357_s1 + $0x88] sm:$0xff] }
 0x4b8   :  { %v1371_v32 = vpack.c.bf16 %v3078_v59, %v3065_v33 }
 0x4b9   :  { %v2177_v47 = vpop.eup %2176  ;;  %v1354_v11 = vadd.f32 %v3021_v51, %v1185_v18  ;;  %v2231_v18 = vld [vmem:[%s3354_s2 + $0x48] sm:$0xff] }
 0x4ba   :  { %v1361_v2 = vsub.f32 %v2855_v3, %v2177_v47 }
 0x4bb   :  { %2178 = vtanh.f32 %v1354_v11  ;;  %v2232_v11 = vld [vmem:[%s3357_s1 + $0xa8] sm:$0xff] }
 0x4bc   :  { %v1365_v14 = vmul.f32 %v1361_v2, %v1330_v62 }
 0x4be   :  { %v3087_v29 = vadd.f32 %v2177_v47, %v1365_v14 }
 0x4c1   :  { %v2179_v51 = vpop.eup %2178 }
 0x4c2   :  { %v1362_v3 = vsub.f32 %v2858_v60, %v2179_v51  ;;  %v3416_v60 = vld [vmem:[#allocation15_spill] sm:$0xff] }
 0x4c4   :  { %v1366_v50 = vmul.f32 %v1362_v3, %v1345_v30 }
 0x4c6   :  { %v3090_v41 = vadd.f32 %v2179_v51, %v1366_v50 }
 0x4c8   :  { %v1372_v26 = vpack.c.bf16 %v3090_v41, %v3087_v29 }
 0x4ca   :  { %1379 = vmatpush.bf16.msrb.mxu3 %v1372_v26  ;;  %v2238_v26 = vld [vmem:[%s3357_s1 + $0x80] sm:$0xff] }
 0x4ce   :  { %1380 = vmatpush.bf16.msrb.mxu3 %v1371_v32 }
 0x4d1   :  { %2012 = vmatmul.msk.bf16.vlgmr.msrb.gmra.mxu3 %vm318_vm0, %v2226_v20  ;;  %v2239_v20 = vld [vmem:[%s3354_s2 + $0x58] sm:$0xff] }
 0x4e1   :  { %2013 = vmatmul.msk.bf16.gmra.mxu3 %vm318_vm0, %v2874_v1  ;;  %v2229_v1 = vld [vmem:[%s3354_s2 + $0x38] sm:$0xff] }
 0x4f1   :  { %2014 = vmatmul.msk.bf16.gmra.mxu3 %vm318_vm0, %v2884_v6  ;;  %v2230_v6 = vld [vmem:[%s3354_s2 + $0x40] sm:$0xff] }
 0x501   :  { %2015 = vmatmul.msk.bf16.gmra.mxu3 %vm318_vm0, %v3416_v60 }
 0x511   :  { %2016 = vmatmul.msk.bf16.gmra.mxu3 %vm318_vm0, %v3417_v4 }
 0x521   :  { %2017 = vmatmul.msk.bf16.gmra.mxu3 %vm318_vm0, %v2227_v45 }
 0x531   :  { %2018 = vmatmul.msk.bf16.gmra.mxu3 %vm318_vm0, %v2228_v58 }
 0x541   :  { %2019 = vmatmul.msk.bf16.gmra.mxu3 %vm318_vm0, %v2229_v1 }
 0x551   :  { %2020 = vmatmul.msk.bf16.gmra.mxu3 %vm318_vm0, %v2230_v6 }
 0x554   :  { %v1382_v23 = vpop.f32.mrf.mxu3 }
 0x555   :  { %v1442_v0 = vpack.c.bf16 %v1382_v23, %v1382_v23 }
 0x557   :  { %v1458_v10 = vunpack.c.l.b16 %v1442_v0 }
 0x55c   :  { %v1384_v63 = vpop.f32.mrf.mxu3 }
 0x55d   :  { %v1443_v48 = vpack.c.bf16 %v1384_v63, %v1384_v63 }
 0x55f   :  { %v1459_v43 = vunpack.c.l.b16 %v1443_v48 }
 0x561   :  { %v1462_v5 = vpack.c.b16 %v1459_v43, %v1458_v10  ;;  %2021 = vmatmul.msk.bf16.gmra.mxu3 %vm318_vm0, %v2231_v18 }
 0x563   :  { %1510 = vmatmul.bf16.vlgmr.msra.gmra.mxu0 %v1462_v5 }
 0x564   :  { %v1387_v9 = vpop.f32.mrf.mxu3  ;;  %1540 = vmatpush.bf16.msra.mxu0 %v2947_v61  ;;  %v2234_v61 = vld [vmem:[%s3354_s2 + $0x50] sm:$0xff] }
 0x565   :  { %v1444_v21 = vpack.c.bf16 %v1387_v9, %v1387_v9 }
 0x567   :  { %v1460_v2 = vunpack.c.l.b16 %v1444_v21 }
 0x568   :  { %1541 = vmatpush.bf16.msra.mxu0 %v2955_v24 }
 0x56c   :  { %v1389_v47 = vpop.f32.mrf.mxu3  ;;  %1542 = vmatpush.bf16.msra.mxu0 %v2232_v11 }
 0x56d   :  { %v1445_v56 = vpack.c.bf16 %v1389_v47, %v1389_v47 }
 0x56f   :  { %v1461_v62 = vunpack.c.l.b16 %v1445_v56 }
 0x570   :  { %1543 = vmatpush.bf16.msra.mxu0 %v2233_v31 }
 0x571   :  { %v1463_v14 = vpack.c.b16 %v1461_v62, %v1460_v2  ;;  %2022 = vmatmul.msk.bf16.gmra.mxu3 %vm318_vm0, %v2234_v61 }
 0x573   :  { %1515 = vmatmul.bf16.gmra.mxu0 %v1463_v14 }
 0x574   :  { %v1392_v24 = vpop.f32.mrf.mxu3  ;;  %1544 = vmatpush.bf16.msra.mxu0 %v2235_v39 }
 0x575   :  { %v1446_v54 = vpack.c.bf16 %v1392_v24, %v1392_v24 }
 0x577   :  { %v1470_v30 = vunpack.c.l.b16 %v1446_v54 }
 0x578   :  { %1545 = vmatpush.bf16.msra.mxu0 %v2236_v7 }
 0x57c   :  { %v1394_v51 = vpop.f32.mrf.mxu3  ;;  %1546 = vmatpush.bf16.msra.mxu0 %v2237_v22 }
 0x57d   :  { %v1447_v3 = vpack.c.bf16 %v1394_v51, %v1394_v51 }
 0x57f   :  { %v1471_v50 = vunpack.c.l.b16 %v1447_v3 }
 0x580   :  { %1547 = vmatpush.bf16.msra.mxu0 %v2238_v26 }
 0x581   :  { %v1474_v32 = vpack.c.b16 %v1471_v50, %v1470_v30  ;;  %2023 = vmatmul.msk.bf16.gmra.mxu3 %vm318_vm0, %v2239_v20 }
 0x583   :  { %1529 = vmatmul.bf16.vlgmr.msrb.gmra.mxu0 %v1474_v32 }
 0x584   :  { %v1397_v60 = vpop.f32.mrf.mxu3 }
 0x585   :  { %v1448_v4 = vpack.c.bf16 %v1397_v60, %v1397_v60 }
 0x587   :  { %v1472_v1 = vunpack.c.l.b16 %v1448_v4 }
 0x58c   :  { %v1399_v45 = vpop.f32.mrf.mxu3 }
 0x58d   :  { %v1449_v58 = vpack.c.bf16 %v1399_v45, %v1399_v45 }
 0x58f   :  { %v1473_v6 = vunpack.c.l.b16 %v1449_v58 }
 0x591   :  { %v1475_v23 = vpack.c.b16 %v1473_v6, %v1472_v1 }
 0x593   :  { %1534 = vmatmul.bf16.gmra.mxu0 %v1475_v23 }
 0x594   :  { %v1402_v0 = vpop.f32.mrf.mxu3 }
 0x595   :  { %v1450_v63 = vpack.c.bf16 %v1402_v0, %v1402_v0  ;;  %v2240_v0 = vld [vmem:[%s3358_s3] sm:$0xff] }
 0x597   :  { %v1482_v43 = vunpack.c.l.b16 %v1450_v63  ;;  %v2241_v63 = vld [vmem:[%s3358_s3 + $0x8] sm:$0xff] }
 0x59c   :  { %v1404_v48 = vpop.f32.mrf.mxu3 }
 0x59d   :  { %v1451_v10 = vpack.c.bf16 %v1404_v48, %v1404_v48  ;;  %v2242_v48 = vld [vmem:[%s3358_s3 + $0x10] sm:$0xff] }
 0x59f   :  { %v1483_v5 = vunpack.c.l.b16 %v1451_v10  ;;  %v2243_v10 = vld [vmem:[%s3358_s3 + $0x18] sm:$0xff] }
 0x5a1   :  { %v1486_v18 = vpack.c.b16 %v1483_v5, %v1482_v43  ;;  %v2244_v43 = vld [vmem:[%s3358_s3 + $0x20] sm:$0xff]  ;;  %v2245_v5 = vld [vmem:[%s3358_s3 + $0x28] sm:$0xff] }
 0x5a3   :  { %1548 = vmatmul.bf16.vlgmr.msra.gmra.mxu0 %v1486_v18 }
 0x5a4   :  { %v1407_v9 = vpop.f32.mrf.mxu3 }
 0x5a5   :  { %v1452_v21 = vpack.c.bf16 %v1407_v9, %v1407_v9 }
 0x5a7   :  { %v1484_v56 = vunpack.c.l.b16 %v1452_v21 }
 0x5ac   :  { %v1409_v47 = vpop.f32.mrf.mxu3 }
 0x5ad   :  { %v1453_v11 = vpack.c.bf16 %v1409_v47, %v1409_v47 }
 0x5af   :  { %v1485_v2 = vunpack.c.l.b16 %v1453_v11 }
 0x5b1   :  { %v1487_v62 = vpack.c.b16 %v1485_v2, %v1484_v56 }
 0x5b3   :  { %1553 = vmatmul.bf16.vlgmr.msra.gmra.mxu1 %v1487_v62 }
 0x5b4   :  { %v1412_v18 = vpop.f32.mrf.mxu3 }
 0x5b5   :  { %v1490_v62 = vadd.f32 %v1412_v18, %v2704_v28 }
 0x5bc   :  { %v1414_v9 = vpop.f32.mrf.mxu3 }
 0x5c4   :  { %v1417_v21 = vpop.f32.mrf.mxu3 }
 0x5cc   :  { %v1419_v11 = vpop.f32.mrf.mxu3 }
 0x5e0   :  { %v1511_v31 = vpop.f32.mrf.mxu0 }
 0x5e8   :  { %v1513_v14 = vpop.f32.mrf.mxu0 }
 0x5f0   :  { %v1516_v61 = vpop.f32.mrf.mxu0 }
 0x5f8   :  { %v1518_v24 = vpop.f32.mrf.mxu0 }
 0x600   :  { %v1530_v39 = vpop.f32.mrf.mxu0 }
 0x601   :  { %v1531_v45 = vadd.f32 %v1530_v39, %v1511_v31 }
 0x608   :  { %v1532_v7 = vpop.f32.mrf.mxu0 }
 0x609   :  { %v1533_v20 = vadd.f32 %v1532_v7, %v1513_v14  ;;  %v1422_v14 = vpop.f32.mrf.mxu3  ;;  %v1491_v7 = vadd.f32 %v1414_v9, %v3405_v53  ;;  %v1493_v53 = vadd.f32 %v1419_v11, %v2711_v36 }
 0x610   :  { %v1535_v54 = vpop.f32.mrf.mxu0 }
 0x611   :  { %v1536_v30 = vadd.f32 %v1535_v54, %v1516_v61 }
 0x618   :  { %v1537_v51 = vpop.f32.mrf.mxu0 }
 0x619   :  { %v1538_v50 = vadd.f32 %v1537_v51, %v1518_v24 }
 0x620   :  { %v1549_v22 = vpop.f32.mrf.mxu0 }
 0x621   :  { %v1550_v6 = vadd.f32 %v1549_v22, %v1531_v45  ;;  %v1424_v22 = vpop.f32.mrf.mxu3 }
 0x622   :  { %v1495_v36 = vadd.f32 %v1424_v22, %v3408_v35 }
 0x628   :  { %v1551_v26 = vpop.f32.mrf.mxu0 }
 0x629   :  { %v1552_v58 = vadd.f32 %v1551_v26, %v1533_v20  ;;  %v1427_v45 = vpop.f32.mrf.mxu3 }
 0x62b   :  { %v1559_v23 = vpack.c.bf16 %v1552_v58, %v1550_v6 }
 0x630   :  { %v1554_v3 = vpop.f32.mrf.mxu1 }
 0x631   :  { %v1555_v60 = vadd.f32 %v1554_v3, %v1536_v30 }
 0x638   :  { %v1556_v32 = vpop.f32.mrf.mxu1 }
 0x639   :  { %v1557_v4 = vadd.f32 %v1556_v32, %v1538_v50 }
 0x63b   :  { %v1560_v1 = vpack.c.bf16 %v1557_v4, %v1555_v60  ;;  %v1494_v60 = vadd.f32 %v1422_v14, %v2713_v25 }
 0x63d   :  { %1567 = vmatpush.bf16.msra.mxu2 %v1560_v1 }
 0x641   :  { %1568 = vmatpush.bf16.msra.mxu2 %v1559_v23 }
 0x644   :  { %2024 = vmatmul.msk.bf16.vlgmr.msra.gmra.mxu2 %vm318_vm0, %v2240_v0 }
 0x654   :  { %2025 = vmatmul.msk.bf16.gmra.mxu2 %vm318_vm0, %v2241_v63 }
 0x664   :  { %2026 = vmatmul.msk.bf16.gmra.mxu2 %vm318_vm0, %v2242_v48 }
 0x674   :  { %2027 = vmatmul.msk.bf16.gmra.mxu2 %vm318_vm0, %v2243_v10  ;;  %v1429_v10 = vpop.f32.mrf.mxu3 }
 0x684   :  { %2028 = vmatmul.msk.bf16.gmra.mxu2 %vm318_vm0, %v2244_v43 }
 0x694   :  { %2029 = vmatmul.msk.bf16.gmra.mxu2 %vm318_vm0, %v2245_v5 }
 0x6c7   :  { %v1570_v47 = vpop.f32.mrf.mxu2 }
 0x6c8   :  { %v1571_v56 = vadd.f32 %v1570_v47, %v2692_v34  ;;  %v1492_v34 = vadd.f32 %v1417_v21, %v3403_v13 }
 0x6ca   :  { %v1600_v31 = vadd.f32 %v1571_v56, %v1490_v62 }
 0x6cc   :  { %v2030_v61 = vmul.f32 -1.442695, %v1600_v31 }
 0x6ce   :  { %2180 = vpow2.f32 %v2030_v61 }
 0x6cf   :  { %v1572_v2 = vpop.f32.mrf.mxu2 }
 0x6d0   :  { %v1573_v24 = vadd.f32 %v1572_v2, %v2696_v8 }
 0x6d2   :  { %v1601_v54 = vadd.f32 %v1573_v24, %v1491_v7  ;;  %v1432_v7 = vpop.f32.mrf.mxu3 }
 0x6d4   :  { %v2031_v3 = vmul.f32 -1.442695, %v1601_v54  ;;  %v2181_v50 = vpop.eup %2180 }
 0x6d5   :  { %v3186_v28 = vadd.f32 1.0, %v2181_v50 }
 0x6d6   :  { %2182 = vpow2.f32 %v2031_v3 }
 0x6d7   :  { %v1575_v39 = vpop.f32.mrf.mxu2  ;;  %2184 = vrcp.f32 %v3186_v28  ;;  %vm1625_vm5 = vweird.f32 %v3186_v28 }
 0x6d8   :  { %v1576_v51 = vadd.f32 %v1575_v39, %v3404_v55 }
 0x6da   :  { %v1602_v26 = vadd.f32 %v1576_v51, %v1492_v34  ;;  %v1497_v34 = vadd.f32 %v1429_v10, %v3411_v57  ;;  %v1498_v57 = vadd.f32 %v1432_v7, %v2734_v44 }
 0x6dc   :  { %v2032_v32 = vmul.f32 -1.442695, %v1602_v26  ;;  %v2183_v4 = vpop.eup %2182 }
 0x6dd   :  { %v3193_v1 = vadd.f32 1.0, %v2183_v4  ;;  %v2185_v23 = vpop.eup %2184 }
 0x6de   :  { %2186 = vpow2.f32 %v2032_v32  ;;  %vm1626_vm0 = vweird.f32 %v2185_v23 }
 0x6df   :  { %v1577_v30 = vpop.f32.mrf.mxu2  ;;  %vm1627_vm6 = vmor %vm1625_vm5, %vm1626_vm0  ;;  %vm1640_vm9 = vweird.f32 %v3193_v1 }
 0x6e0   :  { %v1578_v8 = vadd.f32 %v1577_v30, %v3406_v42  ;;  %v1629_v30 = vand.u32 2147483647, %v3186_v28 }
 0x6e2   :  { %v1603_v13 = vadd.f32 %v1578_v8, %v1493_v53  ;;  %vm1630_vm7 = vcmp.eq.f32.partialorder %v1629_v30, 8.507059e+37 }
 0x6e4   :  { %v2033_v0 = vmul.f32 -1.442695, %v1603_v13  ;;  %v2187_v63 = vpop.eup %2186 }
 0x6e5   :  { %v3199_v43 = vadd.f32 1.0, %v2187_v63 }
 0x6e7   :  { %v1580_v20 = vpop.f32.mrf.mxu2  ;;  %vm1655_vm14 = vweird.f32 %v3199_v43 }
 0x6e8   :  { %v1581_v55 = vadd.f32 %v1580_v20, %v3407_v15  ;;  %v1621_v15 = vmul.f32 %v2185_v23, %v3186_v28 }
 0x6ea   :  { %v1680_v58 = vadd.f32 %v1581_v55, %v1494_v60  ;;  %v1622_v21 = vsub.f32 1.0, %v1621_v15 }
 0x6ec   :  { %v2034_v6 = vmul.f32 -1.442695, %v1680_v58  ;;  %v1623_v2 = vmul.f32 %v2185_v23, %v1622_v21 }
 0x6ee   :  { %2188 = vpow2.f32 %v2034_v6  ;;  %v1624_v51 = vadd.f32 %v2185_v23, %v1623_v2 }
 0x6ef   :  { %v1582_v42 = vpop.f32.mrf.mxu2  ;;  %2190 = vrcp.f32 %v3193_v1 }
 0x6f0   :  { %v1583_v25 = vadd.f32 %v1582_v42, %v3409_v52  ;;  %2192 = vpow2.f32 %v2033_v0  ;;  %v1496_v52 = vadd.f32 %v1427_v45, %v2729_v40  ;;  %v1628_v8 = vsel %vm1627_vm6, %v2185_v23, %v1624_v51  ;;  %v1434_v42 = vpop.f32.mrf.mxu3 }
 0x6f1   :  { %v1646_v0 = vand.u32 2147483648, %v3193_v1 }
 0x6f2   :  { %v1681_v48 = vadd.f32 %v1583_v25, %v1495_v36  ;;  %v1644_v36 = vand.u32 2147483647, %v3193_v1 }
 0x6f4   :  { %v2189_v5 = vpop.eup %2188  ;;  %v2035_v18 = vmul.f32 -1.442695, %v1681_v48  ;;  %vm1645_vm11 = vcmp.eq.f32.partialorder %v1644_v36, 8.507059e+37 }
 0x6f5   :  { %v3201_v9 = vadd.f32 1.0, %v2189_v5  ;;  %v3203_v47 = vpop.eup %2190 }
 0x6f6   :  { %2194 = vpow2.f32 %v2035_v18  ;;  %v2193_v11 = vpop.eup %2192  ;;  %v1636_v62 = vmul.f32 %v3203_v47, %v3193_v1  ;;  %vm1641_vm8 = vweird.f32 %v3203_v47 }
 0x6f7   :  { %2196 = vrcp.f32 %v3199_v43  ;;  %v1585_v35 = vpop.f32.mrf.mxu2  ;;  %v3211_v14 = vadd.f32 1.0, %v2193_v11  ;;  %vm1642_vm10 = vmor %vm1640_vm9, %vm1641_vm8  ;;  %vm1705_vm15 = vweird.f32 %v3201_v9  ;;  %v1709_v7 = vand.u32 2147483647, %v3201_v9 }
 0x6f8   :  { %2198 = vrcp.f32 %v3201_v9  ;;  %v1586_v56 = vadd.f32 %v1585_v35, %v2700_v17  ;;  %v1637_v40 = vsub.f32 1.0, %v1636_v62  ;;  %v1631_v17 = vand.u32 2147483648, %v3186_v28 }
 0x6f9   :  { %v1647_v35 = vor.u32 1.1754944e-38, %v1646_v0  ;;  %vm1710_vm3 = vcmp.eq.f32.partialorder %v1709_v7, 8.507059e+37  ;;  %vm1670_vm6 = vweird.f32 %v3211_v14 }
 0x6fa   :  { %v1682_v31 = vadd.f32 %v1586_v56, %v1496_v52  ;;  %v1638_v20 = vmul.f32 %v3203_v47, %v1637_v40  ;;  %v1632_v60 = vor.u32 1.1754944e-38, %v1631_v17  ;;  %v1659_v17 = vand.u32 2147483647, %v3199_v43 }
 0x6fc   :  { %v2195_v61 = vpop.eup %2194  ;;  %v2036_v24 = vmul.f32 -1.442695, %v1682_v31  ;;  %v1633_v4 = vsel %vm1630_vm7, %v1632_v60, %v1628_v8  ;;  %v1639_v6 = vadd.f32 %v3203_v47, %v1638_v20  ;;  %vm1660_vm4 = vcmp.eq.f32.partialorder %v1659_v17, 8.507059e+37 }
 0x6fd   :  { %v3213_v39 = vpop.eup %2196  ;;  %v3215_v54 = vadd.f32 1.0, %v2195_v61  ;;  %v1760_v44 = vmul.f32 %v1633_v4, %v1498_v57  ;;  %v1711_v61 = vand.u32 2147483648, %v3201_v9 }
 0x6fe   :  { %v3217_v22 = vpop.eup %2198  ;;  %2200 = vpow2.f32 %v2036_v24  ;;  %v1651_v26 = vmul.f32 %v3213_v39, %v3199_v43  ;;  %v1643_v18 = vsel %vm1642_vm10, %v3203_v47, %v1639_v6  ;;  %vm1656_vm12 = vweird.f32 %v3213_v39 }
 0x6ff   :  { %2202 = vrcp.f32 %v3211_v14  ;;  %v1587_v3 = vpop.f32.mrf.mxu2  ;;  %v1701_v32 = vmul.f32 %v3217_v22, %v3201_v9  ;;  %vm1706_vm13 = vweird.f32 %v3217_v22  ;;  %v1499_v47 = vadd.f32 %v1434_v42, %v3414_v19  ;;  %vm3268_vm1 = vmor %vm1655_vm14, %vm1656_vm12 }
 0x700   :  { %2204 = vrcp.f32 %v3215_v54  ;;  %v1588_v50 = vadd.f32 %v1587_v3, %v3412_v12  ;;  %v1652_v45 = vsub.f32 1.0, %v1651_v26  ;;  %v1661_v24 = vand.u32 2147483648, %v3199_v43  ;;  %vm3274_vm2 = vmor %vm1705_vm15, %vm1706_vm13 }
 0x701   :  { %v1702_v13 = vsub.f32 1.0, %v1701_v32  ;;  %v1712_v20 = vor.u32 1.1754944e-38, %v1711_v61  ;;  %v1676_v6 = vand.u32 2147483648, %v3211_v14  ;;  %vm1720_vm7 = vweird.f32 %v3215_v54 }
 0x702   :  { %v1683_v53 = vadd.f32 %v1588_v50, %v1497_v34  ;;  %v1653_v15 = vmul.f32 %v3213_v39, %v1652_v45  ;;  %v1437_v34 = vpop.f32.mrf.mxu3  ;;  %v1724_v42 = vand.u32 2147483647, %v3215_v54 }
 0x703   :  { %v1703_v10 = vmul.f32 %v3217_v22, %v1702_v13  ;;  %v1500_v13 = vadd.f32 %v1437_v34, %v3410_v37  ;;  %v1674_v37 = vand.u32 2147483647, %v3211_v14 }
 0x704   :  { %v2201_v28 = vpop.eup %2200  ;;  %v2037_v55 = vmul.f32 -1.442695, %v1683_v53  ;;  %v1654_v11 = vadd.f32 %v3213_v39, %v1653_v15  ;;  %v1662_v53 = vor.u32 1.1754944e-38, %v1661_v24  ;;  %vm1725_vm10 = vcmp.eq.f32.partialorder %v1724_v42, 8.507059e+37 }
 0x705   :  { %v3232_v12 = vpop.eup %2202  ;;  %v3234_v58 = vadd.f32 1.0, %v2201_v28  ;;  %v1704_v62 = vadd.f32 %v3217_v22, %v1703_v10 }
 0x706   :  { %v3238_v23 = vpop.eup %2204  ;;  %2206 = vpow2.f32 %v2037_v55  ;;  %v1666_v48 = vmul.f32 %v3232_v12, %v3211_v14  ;;  %v1658_v32 = vsel %vm3268_vm1, %v3213_v39, %v1654_v11  ;;  %vm1671_vm0 = vweird.f32 %v3232_v12 }
 0x707   :  { %v1590_v63 = vpop.f32.mrf.mxu2  ;;  %2208 = vrcp.f32 %v3234_v58  ;;  %v1716_v5 = vmul.f32 %v3238_v23, %v3215_v54  ;;  %v1708_v43 = vsel %vm3274_vm2, %v3217_v22, %v1704_v62  ;;  %v1663_v57 = vsel %vm1660_vm4, %v1662_v53, %v1658_v32  ;;  %vm3304_vm8 = vmor %vm1670_vm6, %vm1671_vm0 }
 0x708   :  { %v1591_v25 = vadd.f32 %v1590_v63, %v3413_v49  ;;  %v1648_v49 = vsel %vm1645_vm11, %v1647_v35, %v1643_v18  ;;  %v1667_v52 = vsub.f32 1.0, %v1666_v48  ;;  %v1713_v28 = vsel %vm1710_vm3, %v1712_v20, %v1708_v43 }
 0x709   :  { %v1717_v56 = vsub.f32 1.0, %v1716_v5  ;;  %v1761_v30 = vmul.f32 %v1648_v49, %v1499_v47  ;;  %vm1721_vm5 = vweird.f32 %v3238_v23  ;;  %v1762_v15 = vmul.f32 %v1663_v57, %v1500_v13 }
 0x70a   :  { %v1764_v21 = vadd.f32 %v1760_v44, %v1591_v25  ;;  %v1668_v9 = vmul.f32 %v3232_v12, %v1667_v52  ;;  %vm3309_vm9 = vmor %vm1720_vm7, %vm1721_vm5  ;;  %v1439_v35 = vpop.f32.mrf.mxu3  ;;  %vm1675_vm11 = vcmp.eq.f32.partialorder %v1674_v37, 8.507059e+37  ;;  %v1741_v62 = vand.u32 2147483648, %v3234_v58 }
 0x70b   :  { %v1718_v50 = vmul.f32 %v3238_v23, %v1717_v56  ;;  %vm1735_vm13 = vweird.f32 %v3234_v58  ;;  %v1739_v61 = vand.u32 2147483647, %v3234_v58 }
 0x70c   :  { %v2207_v1 = vpop.eup %2206  ;;  %2210 = vtanh.f32 %v1764_v21  ;;  %v1669_v55 = vadd.f32 %v3232_v12, %v1668_v9  ;;  %v1677_v21 = vor.u32 1.1754944e-38, %v1676_v6  ;;  %v1742_v17 = vor.u32 1.1754944e-38, %v1741_v62 }
 0x70d   :  { %v3254_v2 = vadd.f32 1.0, %v2207_v1  ;;  %v3258_v31 = vpop.eup %2208  ;;  %v1719_v45 = vadd.f32 %v3238_v23, %v1718_v50  ;;  %vm1740_vm15 = vcmp.eq.f32.partialorder %v1739_v61, 8.507059e+37 }
 0x70e   :  { %v1731_v26 = vmul.f32 %v3258_v31, %v3234_v58  ;;  %v1673_v10 = vsel %vm3304_vm8, %v3232_v12, %v1669_v55  ;;  %vm1736_vm12 = vweird.f32 %v3258_v31  ;;  %v1501_v12 = vadd.f32 %v1439_v35, %v2725_v46 }
 0x70f   :  { %v1592_v51 = vpop.f32.mrf.mxu2  ;;  %2212 = vrcp.f32 %v3254_v2  ;;  %v1723_v14 = vsel %vm3309_vm9, %v3238_v23, %v1719_v45  ;;  %v1678_v11 = vsel %vm1675_vm11, %v1677_v21, %v1673_v10  ;;  %vm1737_vm14 = vmor %vm1735_vm13, %vm1736_vm12  ;;  %v1756_v9 = vand.u32 2147483648, %v3254_v2 }
 0x710   :  { %v1593_v3 = vadd.f32 %v1592_v51, %v3415_v16  ;;  %v1732_v22 = vsub.f32 1.0, %v1731_v26  ;;  %v1763_v7 = vmul.f32 %v1678_v11, %v1501_v12  ;;  %vm1750_vm2 = vweird.f32 %v3254_v2 }
 0x711   :  { %v1757_v26 = vor.u32 1.1754944e-38, %v1756_v9 }
 0x712   :  { %v2211_v8 = vpop.eup %2210  ;;  %v1765_v16 = vadd.f32 %v1761_v30, %v1593_v3  ;;  %v1733_v48 = vmul.f32 %v3258_v31, %v1732_v22 }
 0x713   :  { %v1772_v60 = vsub.f32 %v3065_v33, %v2211_v8  ;;  %v1726_v33 = vand.u32 2147483648, %v3215_v54 }
 0x714   :  { %2214 = vtanh.f32 %v1765_v16  ;;  %v1734_v23 = vadd.f32 %v3258_v31, %v1733_v48 }
 0x715   :  { %v1776_v4 = vmul.f32 %v1772_v60, %v1713_v28  ;;  %v3294_v39 = vpop.eup %2212 }
 0x716   :  { %v1746_v54 = vmul.f32 %v3294_v39, %v3254_v2  ;;  %v1738_v46 = vsel %vm1737_vm14, %v3258_v31, %v1734_v23  ;;  %vm1751_vm1 = vweird.f32 %v3294_v39  ;;  %v1754_v31 = vand.u32 2147483647, %v3254_v2 }
 0x717   :  { %v1780_v0 = vadd.f32 %v2211_v8, %v1776_v4  ;;  %v1595_v63 = vpop.f32.mrf.mxu2  ;;  %v1743_v58 = vsel %vm1740_vm15, %v1742_v17, %v1738_v46  ;;  %vm1752_vm3 = vmor %vm1750_vm2, %vm1751_vm1 }
 0x718   :  { %v1596_v25 = vadd.f32 %v1595_v63, %v2783_v27  ;;  %v1727_v27 = vor.u32 1.1754944e-38, %v1726_v33  ;;  %v1747_v52 = vsub.f32 1.0, %v1746_v54  ;;  %vm1755_vm4 = vcmp.eq.f32.partialorder %v1754_v31, 8.507059e+37 }
 0x719   :  { %1784 = vst [vmem:[%s3359_s6] sm:$0xff] %v1780_v0 }
 0x71a   :  { %v2215_v5 = vpop.eup %2214  ;;  %v1766_v18 = vadd.f32 %v1762_v15, %v1596_v25  ;;  %v1728_v49 = vsel %vm1725_vm10, %v1727_v27, %v1723_v14  ;;  %v1748_v51 = vmul.f32 %v3294_v39, %v1747_v52 }
 0x71b   :  { %v1773_v1 = vsub.f32 %v3078_v59, %v2215_v5 }
 0x71c   :  { %2216 = vtanh.f32 %v1766_v18 }
 0x71d   :  { %v1777_v56 = vmul.f32 %v1773_v1, %v1728_v49 }
 0x71f   :  { %v1781_v47 = vadd.f32 %v2215_v5, %v1777_v56  ;;  %v1597_v59 = vpop.f32.mrf.mxu2 }
 0x720   :  { %v1598_v24 = vadd.f32 %v1597_v59, %v2769_v38  ;;  %v1749_v38 = vadd.f32 %v3294_v39, %v1748_v51 }
 0x721   :  { %1785 = vst [vmem:[%s3359_s6 + $0x8] sm:$0xff] %v1781_v47 }
 0x722   :  { %v2217_v40 = vpop.eup %2216  ;;  %v1767_v19 = vadd.f32 %v1763_v7, %v1598_v24 }
 0x723   :  { %v1774_v3 = vsub.f32 %v3087_v29, %v2217_v40  ;;  %v1753_v29 = vsel %vm1752_vm3, %v3294_v39, %v1749_v38 }
 0x724   :  { %2218 = vtanh.f32 %v1767_v19  ;;  %v1758_v32 = vsel %vm1755_vm4, %v1757_v26, %v1753_v29 }
 0x725   :  { %v1778_v30 = vmul.f32 %v1774_v3, %v1743_v58 }
 0x727   :  { %v1782_v34 = vadd.f32 %v2217_v40, %v1778_v30 }
 0x729   :  { %1786 = vst [vmem:[%s3359_s6 + $0x10] sm:$0xff] %v1782_v34 }
 0x72a   :  { %v2219_v50 = vpop.eup %2218 }
 0x72b   :  { %v1775_v43 = vsub.f32 %v3090_v41, %v2219_v50 }
 0x72d   :  { %v1779_v8 = vmul.f32 %v1775_v43, %v1758_v32 }
 0x72f   :  { %v1783_v20 = vadd.f32 %v2219_v50, %v1779_v8 }
 0x731   :  { %1787 = vst [vmem:[%s3359_s6 + $0x18] sm:$0xff] %v1783_v20 }

</bundles_post_ra>
